<compile_context>
chip_gen: v7x
topology: tpu7x:2x2x1
jax: 0.10.0
libtpu: 0.0.40
codegen_flags: <defaults>
</compile_context>

<pallas_src>
import functools

import jax
import jax.numpy as jnp
from jax.experimental import pallas as pl
from jax.experimental.pallas import tpu as pltpu


def _shift_lanes(x, s):
    """y[:, p] = x[:, p + s] if 0 <= p + s < n else 0 (zero-filled lane shift)."""
    n = x.shape[-1]
    if s == 0:
        return x
    pad = jnp.zeros((x.shape[0], abs(s)), x.dtype)
    if s > 0:
        return jnp.concatenate([x[:, s:], pad], axis=-1)
    return jnp.concatenate([pad, x[:, : n + s]], axis=-1)


def _enlayer_kernel(x_ref, w1_ref, b1_ref, w2_ref, b2_ref, o_ref, *, H, W):
    # x_ref : (1, Cin, H*W)      bf16, channel-major flattened image
    # w*_ref: (3, 3, Cout, Cin)  bf16  (HWOI: each tap is an MXU-ready LHS)
    # b*_ref: (Cout, 1)          f32
    # o_ref : (1, Cout, H*W)     f32
    HW = H * W

    # Output-pixel column index (flat layout) for the left/right edge masks.
    col = jax.lax.broadcasted_iota(jnp.int32, (1, HW), 1) % W
    not_left_edge = col >= 1           # taps with dx == 0 read column x-1
    not_right_edge = col <= (W - 2)    # taps with dx == 2 read column x+1

    def conv3x3(inp, w_ref):
        # inp: (C_in, HW) bf16.  Accumulate 9 fat matmuls in f32.
        acc = jnp.zeros((w_ref.shape[2], HW), jnp.float32)
        for dy in range(3):
            for dx in range(3):
                shift = (dy - 1) * W + (dx - 1)
                xs = _shift_lanes(inp, shift)          # row OOB -> zeros
                if dx == 0:
                    xs = jnp.where(not_left_edge, xs, jnp.zeros_like(xs))
                elif dx == 2:
                    xs = jnp.where(not_right_edge, xs, jnp.zeros_like(xs))
                acc = acc + jnp.dot(w_ref[dy, dx], xs,
                                    preferred_element_type=jnp.float32)
        return acc

    x = x_ref[0]                                       # (Cin, HW) bf16
    h = conv3x3(x, w1_ref) + b1_ref[...]               # (Cmid, HW) f32
    h = jnp.maximum(h, 0.0).astype(jnp.bfloat16)       # ReLU, bf16 for 2nd MXU pass
    y = conv3x3(h, w2_ref) + b2_ref[...]               # (Cout, HW) f32
    o_ref[...] = y.reshape(o_ref.shape).astype(o_ref.dtype)


def enlayer_forward(x_nchw, params):
    """EnLayer.forward: conv3x3 -> ReLU -> conv3x3.  Input/output are NCHW f32."""
    N, Cin, H, W = x_nchw.shape
    Cmid = params["b1"].shape[0]
    Cout = params["b2"].shape[0]
    HW = H * W

    # bf16 operands (f32 accumulation happens inside the kernel on the MXU).
    x_flat = x_nchw.reshape(N, Cin, HW).astype(jnp.bfloat16)     # free reshape
    # HWIO -> HWOI so each tap is a (C_out, C_in) matmul LHS.
    w1 = jnp.transpose(params["w1"], (0, 1, 3, 2)).astype(jnp.bfloat16)
    w2 = jnp.transpose(params["w2"], (0, 1, 3, 2)).astype(jnp.bfloat16)
    b1 = params["b1"].reshape(Cmid, 1).astype(jnp.float32)
    b2 = params["b2"].reshape(Cout, 1).astype(jnp.float32)

    kernel = functools.partial(_enlayer_kernel, H=H, W=W)

    y = pl.pallas_call(
        kernel,
        out_shape=jax.ShapeDtypeStruct((N, Cout, HW), jnp.float32),
        grid_spec=pltpu.PrefetchScalarGridSpec(
            num_scalar_prefetch=0,
            grid=(N,),
            in_specs=[
                pl.BlockSpec((1, Cin, HW), lambda n: (n, 0, 0)),
                pl.BlockSpec((3, 3, Cmid, Cin), lambda n: (0, 0, 0, 0)),
                pl.BlockSpec((Cmid, 1), lambda n: (0, 0)),
                pl.BlockSpec((3, 3, Cout, Cmid), lambda n: (0, 0, 0, 0)),
                pl.BlockSpec((Cout, 1), lambda n: (0, 0)),
            ],
            out_specs=pl.BlockSpec((1, Cout, HW), lambda n: (n, 0, 0)),
        ),
        compiler_params=pltpu.CompilerParams(
            dimension_semantics=("parallel",)),
    )(x_flat, w1, b1, w2, b2)
    return y.reshape(N, Cout, H, W)


def init_enlayer_params(key, in_channel=64, dtype=jnp.float32):
    """Deterministic synthetic parameters matching nn.Conv2d shapes (HWIO)."""
    k1, k2, k3, k4 = jax.random.split(key, 4)
    s1 = 1.0 / (in_channel * 9) ** 0.5
    w1 = jax.random.uniform(k1, (3, 3, in_channel, 64), dtype, -s1, s1)
    b1 = jax.random.uniform(k2, (64,), dtype, -s1, s1)
    s2 = 1.0 / (64 * 9) ** 0.5
    w2 = jax.random.uniform(k3, (3, 3, 64, 64), dtype, -s2, s2)
    b2 = jax.random.uniform(k4, (64,), dtype, -s2, s2)
    return dict(w1=w1, b1=b1, w2=w2, b2=b2)


def _reference_forward(x_nchw, params):
    """Pure-JAX reference (lax.conv), mirroring the kernel's bf16 operand rounding."""
    q = lambda a: a.astype(jnp.bfloat16).astype(jnp.float32)
    dn = ("NHWC", "HWIO", "NHWC")
    hi = jax.lax.Precision.HIGHEST
    x = jnp.transpose(q(x_nchw), (0, 2, 3, 1))
    h = jax.lax.conv_general_dilated(x, q(params["w1"]), (1, 1), "SAME",
                                     dimension_numbers=dn, precision=hi)
    h = jnp.maximum(h + params["b1"], 0.0)
    h = q(h)  # kernel keeps the intermediate activation in bf16
    y = jax.lax.conv_general_dilated(h, q(params["w2"]), (1, 1), "SAME",
                                     dimension_numbers=dn, precision=hi)
    y = y + params["b2"]
    return jnp.transpose(y, (0, 3, 1, 2))


if __name__ == "__main__":
    key = jax.random.PRNGKey(0)
    kx, kp = jax.random.split(key)

    # Small shapes consistent with the module: batch=2, in_channel=64, 16x16.
    in_channel = 64
    x = jax.random.normal(kx, (2, in_channel, 16, 16), jnp.float32)
    params = init_enlayer_params(kp, in_channel=in_channel)

    out = jax.block_until_ready(jax.jit(enlayer_forward)(x, params))
    ref = jax.block_until_ready(_reference_forward(x, params))

    assert out.shape == (2, 64, 16, 16)
    assert out.dtype == jnp.float32
    max_err = float(jnp.max(jnp.abs(out - ref)))
    assert jnp.allclose(out, ref, atol=2e-3, rtol=2e-3), (
        f"mismatch vs reference: max abs err {max_err}")

    print("KERNEL_OK")
</pallas_src>

<mosaic_0001>
module attributes {stable_mosaic.version = 11 : i64} {
  func.func @_enlayer_kernel(%arg0: i32, %arg1: memref<1x64x256xbf16, #tpu.memory_space<vmem>>, %arg2: memref<3x3x64x64xbf16, #tpu.memory_space<vmem>>, %arg3: memref<64x1xf32, #tpu.memory_space<vmem>>, %arg4: memref<3x3x64x64xbf16, #tpu.memory_space<vmem>>, %arg5: memref<64x1xf32, #tpu.memory_space<vmem>>, %arg6: memref<1x64x256xf32, #tpu.memory_space<vmem>>) attributes {dimension_semantics = [#tpu.dimension_semantics<parallel>], iteration_bounds = array<i64: 2>, scalar_prefetch = 0 : i64, scratch_operands = 0 : i64, tpu.core_type = #tpu.core_type<tc>, window_params = [{transform_indices = @transform_0, window_bounds = array<i64: 1, 64, 256>}, {pipeline_mode = #tpu.pipeline_mode<synchronous>, transform_indices = @transform_1, window_bounds = array<i64: 3, 3, 64, 64>}, {pipeline_mode = #tpu.pipeline_mode<synchronous>, transform_indices = @transform_2, window_bounds = array<i64: 64, 1>}, {pipeline_mode = #tpu.pipeline_mode<synchronous>, transform_indices = @transform_3, window_bounds = array<i64: 3, 3, 64, 64>}, {pipeline_mode = #tpu.pipeline_mode<synchronous>, transform_indices = @transform_4, window_bounds = array<i64: 64, 1>}, {transform_indices = @transform_5, window_bounds = array<i64: 1, 64, 256>}]} {
    %0 = tpu.iota {dimensions = array<i32: 1>} : vector<1x256xi32>
    %c16_i32 = arith.constant 16 : i32
    %c0_i32 = arith.constant 0 : i32
    %1 = arith.cmpi eq, %c16_i32, %c0_i32 : i32
    %c1_i32 = arith.constant 1 : i32
    %2 = arith.select %1, %c1_i32, %c16_i32 : i32
    %3 = vector.broadcast %2 : i32 to vector<1x256xi32>
    %4 = arith.remsi %0, %3 : vector<1x256xi32>
    %c0_i32_0 = arith.constant 0 : i32
    %5 = vector.broadcast %c0_i32_0 : i32 to vector<1x256xi32>
    %6 = arith.cmpi ne, %4, %5 : vector<1x256xi32>
    %c0_i32_1 = arith.constant 0 : i32
    %7 = vector.broadcast %c0_i32_1 : i32 to vector<1x256xi32>
    %8 = arith.cmpi slt, %4, %7 : vector<1x256xi32>
    %c0_i32_2 = arith.constant 0 : i32
    %9 = arith.cmpi slt, %2, %c0_i32_2 : i32
    %10 = vector.broadcast %9 : i1 to vector<1x256xi1>
    %11 = vector.broadcast %10 : vector<1x256xi1> to vector<1x256xi1>
    %12 = arith.xori %8, %11 : vector<1x256xi1>
    %13 = arith.andi %12, %6 : vector<1x256xi1>
    %14 = vector.broadcast %2 : i32 to vector<1x256xi32>
    %15 = arith.addi %4, %14 : vector<1x256xi32>
    %16 = arith.select %13, %15, %4 : vector<1x256xi1>, vector<1x256xi32>
    %c1_i32_3 = arith.constant 1 : i32
    %17 = vector.broadcast %c1_i32_3 : i32 to vector<1x256xi32>
    %18 = arith.cmpi sge, %16, %17 : vector<1x256xi32>
    %c14_i32 = arith.constant 14 : i32
    %19 = vector.broadcast %c14_i32 : i32 to vector<1x256xi32>
    %20 = arith.cmpi sle, %16, %19 : vector<1x256xi32>
    %c0 = arith.constant 0 : index
    %c0_4 = arith.constant 0 : index
    %c0_5 = arith.constant 0 : index
    %21 = vector.load %arg1[%c0, %c0_4, %c0_5] : memref<1x64x256xbf16, #tpu.memory_space<vmem>>, vector<1x64x256xbf16>
    %22 = vector.shape_cast %21 : vector<1x64x256xbf16> to vector<64x256xbf16>
    %cst = arith.constant 0.000000e+00 : f32
    %23 = vector.broadcast %cst : f32 to vector<64x256xf32>
    %cst_6 = arith.constant 0.000000e+00 : bf16
    %24 = vector.broadcast %cst_6 : bf16 to vector<64x17xbf16>
    %25 = vector.extract_strided_slice %22 {offsets = [0, 0], sizes = [64, 239], strides = [1, 1]} : vector<64x256xbf16> to vector<64x239xbf16>
    %26 = tpu.concatenate %24, %25 in 1 : vector<64x17xbf16>, vector<64x239xbf16> -> vector<64x256xbf16>
    %cst_7 = arith.constant 0.000000e+00 : bf16
    %27 = vector.broadcast %cst_7 : bf16 to vector<64x256xbf16>
    %28 = vector.shape_cast %18 : vector<1x256xi1> to vector<1x256xi1>
    %29 = vector.broadcast %28 : vector<1x256xi1> to vector<64x256xi1>
    %30 = arith.select %29, %26, %27 : vector<64x256xi1>, vector<64x256xbf16>
    %c0_8 = arith.constant 0 : index
    %c0_9 = arith.constant 0 : index
    %c0_10 = arith.constant 0 : index
    %c0_11 = arith.constant 0 : index
    %31 = vector.load %arg2[%c0_8, %c0_9, %c0_10, %c0_11] : memref<3x3x64x64xbf16, #tpu.memory_space<vmem>>, vector<1x1x64x64xbf16>
    %32 = vector.shape_cast %31 : vector<1x1x64x64xbf16> to vector<64x64xbf16>
    %cst_12 = arith.constant dense<0.000000e+00> : vector<64x256xf32>
    %33 = tpu.matmul %32, %30, %cst_12 {dimension_numbers = #tpu.dot_dimension_numbers<[1], [0], [0], [1], [0, 0, 1, 1], [], []>} : vector<64x64xbf16>, vector<64x256xbf16>, vector<64x256xf32> -> vector<64x256xf32>
    %34 = arith.addf %23, %33 : vector<64x256xf32>
    %cst_13 = arith.constant 0.000000e+00 : bf16
    %35 = vector.broadcast %cst_13 : bf16 to vector<64x16xbf16>
    %36 = vector.extract_strided_slice %22 {offsets = [0, 0], sizes = [64, 240], strides = [1, 1]} : vector<64x256xbf16> to vector<64x240xbf16>
    %37 = tpu.concatenate %35, %36 in 1 : vector<64x16xbf16>, vector<64x240xbf16> -> vector<64x256xbf16>
    %c0_14 = arith.constant 0 : index
    %c1 = arith.constant 1 : index
    %c0_15 = arith.constant 0 : index
    %c0_16 = arith.constant 0 : index
    %38 = vector.load %arg2[%c0_14, %c1, %c0_15, %c0_16] : memref<3x3x64x64xbf16, #tpu.memory_space<vmem>>, vector<1x1x64x64xbf16>
    %39 = vector.shape_cast %38 : vector<1x1x64x64xbf16> to vector<64x64xbf16>
    %cst_17 = arith.constant dense<0.000000e+00> : vector<64x256xf32>
    %40 = tpu.matmul %39, %37, %cst_17 {dimension_numbers = #tpu.dot_dimension_numbers<[1], [0], [0], [1], [0, 0, 1, 1], [], []>} : vector<64x64xbf16>, vector<64x256xbf16>, vector<64x256xf32> -> vector<64x256xf32>
    %41 = arith.addf %34, %40 : vector<64x256xf32>
    %cst_18 = arith.constant 0.000000e+00 : bf16
    %42 = vector.broadcast %cst_18 : bf16 to vector<64x15xbf16>
    %43 = vector.extract_strided_slice %22 {offsets = [0, 0], sizes = [64, 241], strides = [1, 1]} : vector<64x256xbf16> to vector<64x241xbf16>
    %44 = tpu.concatenate %42, %43 in 1 : vector<64x15xbf16>, vector<64x241xbf16> -> vector<64x256xbf16>
    %cst_19 = arith.constant 0.000000e+00 : bf16
    %45 = vector.broadcast %cst_19 : bf16 to vector<64x256xbf16>
    %46 = vector.shape_cast %20 : vector<1x256xi1> to vector<1x256xi1>
    %47 = vector.broadcast %46 : vector<1x256xi1> to vector<64x256xi1>
    %48 = arith.select %47, %44, %45 : vector<64x256xi1>, vector<64x256xbf16>
    %c0_20 = arith.constant 0 : index
    %c2 = arith.constant 2 : index
    %c0_21 = arith.constant 0 : index
    %c0_22 = arith.constant 0 : index
    %49 = vector.load %arg2[%c0_20, %c2, %c0_21, %c0_22] : memref<3x3x64x64xbf16, #tpu.memory_space<vmem>>, vector<1x1x64x64xbf16>
    %50 = vector.shape_cast %49 : vector<1x1x64x64xbf16> to vector<64x64xbf16>
    %cst_23 = arith.constant dense<0.000000e+00> : vector<64x256xf32>
    %51 = tpu.matmul %50, %48, %cst_23 {dimension_numbers = #tpu.dot_dimension_numbers<[1], [0], [0], [1], [0, 0, 1, 1], [], []>} : vector<64x64xbf16>, vector<64x256xbf16>, vector<64x256xf32> -> vector<64x256xf32>
    %52 = arith.addf %41, %51 : vector<64x256xf32>
    %cst_24 = arith.constant 0.000000e+00 : bf16
    %53 = vector.broadcast %cst_24 : bf16 to vector<64x1xbf16>
    %54 = vector.extract_strided_slice %22 {offsets = [0, 0], sizes = [64, 255], strides = [1, 1]} : vector<64x256xbf16> to vector<64x255xbf16>
    %55 = tpu.concatenate %53, %54 in 1 : vector<64x1xbf16>, vector<64x255xbf16> -> vector<64x256xbf16>
    %cst_25 = arith.constant 0.000000e+00 : bf16
    %56 = vector.broadcast %cst_25 : bf16 to vector<64x256xbf16>
    %57 = vector.shape_cast %18 : vector<1x256xi1> to vector<1x256xi1>
    %58 = vector.broadcast %57 : vector<1x256xi1> to vector<64x256xi1>
    %59 = arith.select %58, %55, %56 : vector<64x256xi1>, vector<64x256xbf16>
    %c1_26 = arith.constant 1 : index
    %c0_27 = arith.constant 0 : index
    %c0_28 = arith.constant 0 : index
    %c0_29 = arith.constant 0 : index
    %60 = vector.load %arg2[%c1_26, %c0_27, %c0_28, %c0_29] : memref<3x3x64x64xbf16, #tpu.memory_space<vmem>>, vector<1x1x64x64xbf16>
    %61 = vector.shape_cast %60 : vector<1x1x64x64xbf16> to vector<64x64xbf16>
    %cst_30 = arith.constant dense<0.000000e+00> : vector<64x256xf32>
    %62 = tpu.matmul %61, %59, %cst_30 {dimension_numbers = #tpu.dot_dimension_numbers<[1], [0], [0], [1], [0, 0, 1, 1], [], []>} : vector<64x64xbf16>, vector<64x256xbf16>, vector<64x256xf32> -> vector<64x256xf32>
    %63 = arith.addf %52, %62 : vector<64x256xf32>
    %c1_31 = arith.constant 1 : index
    %c1_32 = arith.constant 1 : index
    %c0_33 = arith.constant 0 : index
    %c0_34 = arith.constant 0 : index
    %64 = vector.load %arg2[%c1_31, %c1_32, %c0_33, %c0_34] : memref<3x3x64x64xbf16, #tpu.memory_space<vmem>>, vector<1x1x64x64xbf16>
    %65 = vector.shape_cast %64 : vector<1x1x64x64xbf16> to vector<64x64xbf16>
    %cst_35 = arith.constant dense<0.000000e+00> : vector<64x256xf32>
    %66 = tpu.matmul %65, %22, %cst_35 {dimension_numbers = #tpu.dot_dimension_numbers<[1], [0], [0], [1], [0, 0, 1, 1], [], []>} : vector<64x64xbf16>, vector<64x256xbf16>, vector<64x256xf32> -> vector<64x256xf32>
    %67 = arith.addf %63, %66 : vector<64x256xf32>
    %cst_36 = arith.constant 0.000000e+00 : bf16
    %68 = vector.broadcast %cst_36 : bf16 to vector<64x1xbf16>
    %69 = vector.extract_strided_slice %22 {offsets = [0, 1], sizes = [64, 255], strides = [1, 1]} : vector<64x256xbf16> to vector<64x255xbf16>
    %70 = tpu.concatenate %69, %68 in 1 : vector<64x255xbf16>, vector<64x1xbf16> -> vector<64x256xbf16>
    %cst_37 = arith.constant 0.000000e+00 : bf16
    %71 = vector.broadcast %cst_37 : bf16 to vector<64x256xbf16>
    %72 = vector.shape_cast %20 : vector<1x256xi1> to vector<1x256xi1>
    %73 = vector.broadcast %72 : vector<1x256xi1> to vector<64x256xi1>
    %74 = arith.select %73, %70, %71 : vector<64x256xi1>, vector<64x256xbf16>
    %c1_38 = arith.constant 1 : index
    %c2_39 = arith.constant 2 : index
    %c0_40 = arith.constant 0 : index
    %c0_41 = arith.constant 0 : index
    %75 = vector.load %arg2[%c1_38, %c2_39, %c0_40, %c0_41] : memref<3x3x64x64xbf16, #tpu.memory_space<vmem>>, vector<1x1x64x64xbf16>
    %76 = vector.shape_cast %75 : vector<1x1x64x64xbf16> to vector<64x64xbf16>
    %cst_42 = arith.constant dense<0.000000e+00> : vector<64x256xf32>
    %77 = tpu.matmul %76, %74, %cst_42 {dimension_numbers = #tpu.dot_dimension_numbers<[1], [0], [0], [1], [0, 0, 1, 1], [], []>} : vector<64x64xbf16>, vector<64x256xbf16>, vector<64x256xf32> -> vector<64x256xf32>
    %78 = arith.addf %67, %77 : vector<64x256xf32>
    %cst_43 = arith.constant 0.000000e+00 : bf16
    %79 = vector.broadcast %cst_43 : bf16 to vector<64x15xbf16>
    %80 = vector.extract_strided_slice %22 {offsets = [0, 15], sizes = [64, 241], strides = [1, 1]} : vector<64x256xbf16> to vector<64x241xbf16>
    %81 = tpu.concatenate %80, %79 in 1 : vector<64x241xbf16>, vector<64x15xbf16> -> vector<64x256xbf16>
    %cst_44 = arith.constant 0.000000e+00 : bf16
    %82 = vector.broadcast %cst_44 : bf16 to vector<64x256xbf16>
    %83 = vector.shape_cast %18 : vector<1x256xi1> to vector<1x256xi1>
    %84 = vector.broadcast %83 : vector<1x256xi1> to vector<64x256xi1>
    %85 = arith.select %84, %81, %82 : vector<64x256xi1>, vector<64x256xbf16>
    %c2_45 = arith.constant 2 : index
    %c0_46 = arith.constant 0 : index
    %c0_47 = arith.constant 0 : index
    %c0_48 = arith.constant 0 : index
    %86 = vector.load %arg2[%c2_45, %c0_46, %c0_47, %c0_48] : memref<3x3x64x64xbf16, #tpu.memory_space<vmem>>, vector<1x1x64x64xbf16>
    %87 = vector.shape_cast %86 : vector<1x1x64x64xbf16> to vector<64x64xbf16>
    %cst_49 = arith.constant dense<0.000000e+00> : vector<64x256xf32>
    %88 = tpu.matmul %87, %85, %cst_49 {dimension_numbers = #tpu.dot_dimension_numbers<[1], [0], [0], [1], [0, 0, 1, 1], [], []>} : vector<64x64xbf16>, vector<64x256xbf16>, vector<64x256xf32> -> vector<64x256xf32>
    %89 = arith.addf %78, %88 : vector<64x256xf32>
    %cst_50 = arith.constant 0.000000e+00 : bf16
    %90 = vector.broadcast %cst_50 : bf16 to vector<64x16xbf16>
    %91 = vector.extract_strided_slice %22 {offsets = [0, 16], sizes = [64, 240], strides = [1, 1]} : vector<64x256xbf16> to vector<64x240xbf16>
    %92 = tpu.concatenate %91, %90 in 1 : vector<64x240xbf16>, vector<64x16xbf16> -> vector<64x256xbf16>
    %c2_51 = arith.constant 2 : index
    %c1_52 = arith.constant 1 : index
    %c0_53 = arith.constant 0 : index
    %c0_54 = arith.constant 0 : index
    %93 = vector.load %arg2[%c2_51, %c1_52, %c0_53, %c0_54] : memref<3x3x64x64xbf16, #tpu.memory_space<vmem>>, vector<1x1x64x64xbf16>
    %94 = vector.shape_cast %93 : vector<1x1x64x64xbf16> to vector<64x64xbf16>
    %cst_55 = arith.constant dense<0.000000e+00> : vector<64x256xf32>
    %95 = tpu.matmul %94, %92, %cst_55 {dimension_numbers = #tpu.dot_dimension_numbers<[1], [0], [0], [1], [0, 0, 1, 1], [], []>} : vector<64x64xbf16>, vector<64x256xbf16>, vector<64x256xf32> -> vector<64x256xf32>
    %96 = arith.addf %89, %95 : vector<64x256xf32>
    %cst_56 = arith.constant 0.000000e+00 : bf16
    %97 = vector.broadcast %cst_56 : bf16 to vector<64x17xbf16>
    %98 = vector.extract_strided_slice %22 {offsets = [0, 17], sizes = [64, 239], strides = [1, 1]} : vector<64x256xbf16> to vector<64x239xbf16>
    %99 = tpu.concatenate %98, %97 in 1 : vector<64x239xbf16>, vector<64x17xbf16> -> vector<64x256xbf16>
    %cst_57 = arith.constant 0.000000e+00 : bf16
    %100 = vector.broadcast %cst_57 : bf16 to vector<64x256xbf16>
    %101 = vector.shape_cast %20 : vector<1x256xi1> to vector<1x256xi1>
    %102 = vector.broadcast %101 : vector<1x256xi1> to vector<64x256xi1>
    %103 = arith.select %102, %99, %100 : vector<64x256xi1>, vector<64x256xbf16>
    %c2_58 = arith.constant 2 : index
    %c2_59 = arith.constant 2 : index
    %c0_60 = arith.constant 0 : index
    %c0_61 = arith.constant 0 : index
    %104 = vector.load %arg2[%c2_58, %c2_59, %c0_60, %c0_61] : memref<3x3x64x64xbf16, #tpu.memory_space<vmem>>, vector<1x1x64x64xbf16>
    %105 = vector.shape_cast %104 : vector<1x1x64x64xbf16> to vector<64x64xbf16>
    %cst_62 = arith.constant dense<0.000000e+00> : vector<64x256xf32>
    %106 = tpu.matmul %105, %103, %cst_62 {dimension_numbers = #tpu.dot_dimension_numbers<[1], [0], [0], [1], [0, 0, 1, 1], [], []>} : vector<64x64xbf16>, vector<64x256xbf16>, vector<64x256xf32> -> vector<64x256xf32>
    %107 = arith.addf %96, %106 : vector<64x256xf32>
    %c0_63 = arith.constant 0 : index
    %c0_64 = arith.constant 0 : index
    %108 = vector.load %arg3[%c0_63, %c0_64] : memref<64x1xf32, #tpu.memory_space<vmem>>, vector<64x1xf32>
    %109 = vector.broadcast %108 : vector<64x1xf32> to vector<64x256xf32>
    %110 = arith.addf %107, %109 : vector<64x256xf32>
    %cst_65 = arith.constant 0.000000e+00 : f32
    %111 = vector.broadcast %cst_65 : f32 to vector<64x256xf32>
    %112 = arith.maximumf %110, %111 : vector<64x256xf32>
    %113 = arith.truncf %112 : vector<64x256xf32> to vector<64x256xbf16>
    %cst_66 = arith.constant 0.000000e+00 : f32
    %114 = vector.broadcast %cst_66 : f32 to vector<64x256xf32>
    %cst_67 = arith.constant 0.000000e+00 : bf16
    %115 = vector.broadcast %cst_67 : bf16 to vector<64x17xbf16>
    %116 = vector.extract_strided_slice %113 {offsets = [0, 0], sizes = [64, 239], strides = [1, 1]} : vector<64x256xbf16> to vector<64x239xbf16>
    %117 = tpu.concatenate %115, %116 in 1 : vector<64x17xbf16>, vector<64x239xbf16> -> vector<64x256xbf16>
    %cst_68 = arith.constant 0.000000e+00 : bf16
    %118 = vector.broadcast %cst_68 : bf16 to vector<64x256xbf16>
    %119 = vector.shape_cast %18 : vector<1x256xi1> to vector<1x256xi1>
    %120 = vector.broadcast %119 : vector<1x256xi1> to vector<64x256xi1>
    %121 = arith.select %120, %117, %118 : vector<64x256xi1>, vector<64x256xbf16>
    %c0_69 = arith.constant 0 : index
    %c0_70 = arith.constant 0 : index
    %c0_71 = arith.constant 0 : index
    %c0_72 = arith.constant 0 : index
    %122 = vector.load %arg4[%c0_69, %c0_70, %c0_71, %c0_72] : memref<3x3x64x64xbf16, #tpu.memory_space<vmem>>, vector<1x1x64x64xbf16>
    %123 = vector.shape_cast %122 : vector<1x1x64x64xbf16> to vector<64x64xbf16>
    %cst_73 = arith.constant dense<0.000000e+00> : vector<64x256xf32>
    %124 = tpu.matmul %123, %121, %cst_73 {dimension_numbers = #tpu.dot_dimension_numbers<[1], [0], [0], [1], [0, 0, 1, 1], [], []>} : vector<64x64xbf16>, vector<64x256xbf16>, vector<64x256xf32> -> vector<64x256xf32>
    %125 = arith.addf %114, %124 : vector<64x256xf32>
    %cst_74 = arith.constant 0.000000e+00 : bf16
    %126 = vector.broadcast %cst_74 : bf16 to vector<64x16xbf16>
    %127 = vector.extract_strided_slice %113 {offsets = [0, 0], sizes = [64, 240], strides = [1, 1]} : vector<64x256xbf16> to vector<64x240xbf16>
    %128 = tpu.concatenate %126, %127 in 1 : vector<64x16xbf16>, vector<64x240xbf16> -> vector<64x256xbf16>
    %c0_75 = arith.constant 0 : index
    %c1_76 = arith.constant 1 : index
    %c0_77 = arith.constant 0 : index
    %c0_78 = arith.constant 0 : index
    %129 = vector.load %arg4[%c0_75, %c1_76, %c0_77, %c0_78] : memref<3x3x64x64xbf16, #tpu.memory_space<vmem>>, vector<1x1x64x64xbf16>
    %130 = vector.shape_cast %129 : vector<1x1x64x64xbf16> to vector<64x64xbf16>
    %cst_79 = arith.constant dense<0.000000e+00> : vector<64x256xf32>
    %131 = tpu.matmul %130, %128, %cst_79 {dimension_numbers = #tpu.dot_dimension_numbers<[1], [0], [0], [1], [0, 0, 1, 1], [], []>} : vector<64x64xbf16>, vector<64x256xbf16>, vector<64x256xf32> -> vector<64x256xf32>
    %132 = arith.addf %125, %131 : vector<64x256xf32>
    %cst_80 = arith.constant 0.000000e+00 : bf16
    %133 = vector.broadcast %cst_80 : bf16 to vector<64x15xbf16>
    %134 = vector.extract_strided_slice %113 {offsets = [0, 0], sizes = [64, 241], strides = [1, 1]} : vector<64x256xbf16> to vector<64x241xbf16>
    %135 = tpu.concatenate %133, %134 in 1 : vector<64x15xbf16>, vector<64x241xbf16> -> vector<64x256xbf16>
    %cst_81 = arith.constant 0.000000e+00 : bf16
    %136 = vector.broadcast %cst_81 : bf16 to vector<64x256xbf16>
    %137 = vector.shape_cast %20 : vector<1x256xi1> to vector<1x256xi1>
    %138 = vector.broadcast %137 : vector<1x256xi1> to vector<64x256xi1>
    %139 = arith.select %138, %135, %136 : vector<64x256xi1>, vector<64x256xbf16>
    %c0_82 = arith.constant 0 : index
    %c2_83 = arith.constant 2 : index
    %c0_84 = arith.constant 0 : index
    %c0_85 = arith.constant 0 : index
    %140 = vector.load %arg4[%c0_82, %c2_83, %c0_84, %c0_85] : memref<3x3x64x64xbf16, #tpu.memory_space<vmem>>, vector<1x1x64x64xbf16>
    %141 = vector.shape_cast %140 : vector<1x1x64x64xbf16> to vector<64x64xbf16>
    %cst_86 = arith.constant dense<0.000000e+00> : vector<64x256xf32>
    %142 = tpu.matmul %141, %139, %cst_86 {dimension_numbers = #tpu.dot_dimension_numbers<[1], [0], [0], [1], [0, 0, 1, 1], [], []>} : vector<64x64xbf16>, vector<64x256xbf16>, vector<64x256xf32> -> vector<64x256xf32>
    %143 = arith.addf %132, %142 : vector<64x256xf32>
    %cst_87 = arith.constant 0.000000e+00 : bf16
    %144 = vector.broadcast %cst_87 : bf16 to vector<64x1xbf16>
    %145 = vector.extract_strided_slice %113 {offsets = [0, 0], sizes = [64, 255], strides = [1, 1]} : vector<64x256xbf16> to vector<64x255xbf16>
    %146 = tpu.concatenate %144, %145 in 1 : vector<64x1xbf16>, vector<64x255xbf16> -> vector<64x256xbf16>
    %cst_88 = arith.constant 0.000000e+00 : bf16
    %147 = vector.broadcast %cst_88 : bf16 to vector<64x256xbf16>
    %148 = vector.shape_cast %18 : vector<1x256xi1> to vector<1x256xi1>
    %149 = vector.broadcast %148 : vector<1x256xi1> to vector<64x256xi1>
    %150 = arith.select %149, %146, %147 : vector<64x256xi1>, vector<64x256xbf16>
    %c1_89 = arith.constant 1 : index
    %c0_90 = arith.constant 0 : index
    %c0_91 = arith.constant 0 : index
    %c0_92 = arith.constant 0 : index
    %151 = vector.load %arg4[%c1_89, %c0_90, %c0_91, %c0_92] : memref<3x3x64x64xbf16, #tpu.memory_space<vmem>>, vector<1x1x64x64xbf16>
    %152 = vector.shape_cast %151 : vector<1x1x64x64xbf16> to vector<64x64xbf16>
    %cst_93 = arith.constant dense<0.000000e+00> : vector<64x256xf32>
    %153 = tpu.matmul %152, %150, %cst_93 {dimension_numbers = #tpu.dot_dimension_numbers<[1], [0], [0], [1], [0, 0, 1, 1], [], []>} : vector<64x64xbf16>, vector<64x256xbf16>, vector<64x256xf32> -> vector<64x256xf32>
    %154 = arith.addf %143, %153 : vector<64x256xf32>
    %c1_94 = arith.constant 1 : index
    %c1_95 = arith.constant 1 : index
    %c0_96 = arith.constant 0 : index
    %c0_97 = arith.constant 0 : index
    %155 = vector.load %arg4[%c1_94, %c1_95, %c0_96, %c0_97] : memref<3x3x64x64xbf16, #tpu.memory_space<vmem>>, vector<1x1x64x64xbf16>
    %156 = vector.shape_cast %155 : vector<1x1x64x64xbf16> to vector<64x64xbf16>
    %cst_98 = arith.constant dense<0.000000e+00> : vector<64x256xf32>
    %157 = tpu.matmul %156, %113, %cst_98 {dimension_numbers = #tpu.dot_dimension_numbers<[1], [0], [0], [1], [0, 0, 1, 1], [], []>} : vector<64x64xbf16>, vector<64x256xbf16>, vector<64x256xf32> -> vector<64x256xf32>
    %158 = arith.addf %154, %157 : vector<64x256xf32>
    %cst_99 = arith.constant 0.000000e+00 : bf16
    %159 = vector.broadcast %cst_99 : bf16 to vector<64x1xbf16>
    %160 = vector.extract_strided_slice %113 {offsets = [0, 1], sizes = [64, 255], strides = [1, 1]} : vector<64x256xbf16> to vector<64x255xbf16>
    %161 = tpu.concatenate %160, %159 in 1 : vector<64x255xbf16>, vector<64x1xbf16> -> vector<64x256xbf16>
    %cst_100 = arith.constant 0.000000e+00 : bf16
    %162 = vector.broadcast %cst_100 : bf16 to vector<64x256xbf16>
    %163 = vector.shape_cast %20 : vector<1x256xi1> to vector<1x256xi1>
    %164 = vector.broadcast %163 : vector<1x256xi1> to vector<64x256xi1>
    %165 = arith.select %164, %161, %162 : vector<64x256xi1>, vector<64x256xbf16>
    %c1_101 = arith.constant 1 : index
    %c2_102 = arith.constant 2 : index
    %c0_103 = arith.constant 0 : index
    %c0_104 = arith.constant 0 : index
    %166 = vector.load %arg4[%c1_101, %c2_102, %c0_103, %c0_104] : memref<3x3x64x64xbf16, #tpu.memory_space<vmem>>, vector<1x1x64x64xbf16>
    %167 = vector.shape_cast %166 : vector<1x1x64x64xbf16> to vector<64x64xbf16>
    %cst_105 = arith.constant dense<0.000000e+00> : vector<64x256xf32>
    %168 = tpu.matmul %167, %165, %cst_105 {dimension_numbers = #tpu.dot_dimension_numbers<[1], [0], [0], [1], [0, 0, 1, 1], [], []>} : vector<64x64xbf16>, vector<64x256xbf16>, vector<64x256xf32> -> vector<64x256xf32>
    %169 = arith.addf %158, %168 : vector<64x256xf32>
    %cst_106 = arith.constant 0.000000e+00 : bf16
    %170 = vector.broadcast %cst_106 : bf16 to vector<64x15xbf16>
    %171 = vector.extract_strided_slice %113 {offsets = [0, 15], sizes = [64, 241], strides = [1, 1]} : vector<64x256xbf16> to vector<64x241xbf16>
    %172 = tpu.concatenate %171, %170 in 1 : vector<64x241xbf16>, vector<64x15xbf16> -> vector<64x256xbf16>
    %cst_107 = arith.constant 0.000000e+00 : bf16
    %173 = vector.broadcast %cst_107 : bf16 to vector<64x256xbf16>
    %174 = vector.shape_cast %18 : vector<1x256xi1> to vector<1x256xi1>
    %175 = vector.broadcast %174 : vector<1x256xi1> to vector<64x256xi1>
    %176 = arith.select %175, %172, %173 : vector<64x256xi1>, vector<64x256xbf16>
    %c2_108 = arith.constant 2 : index
    %c0_109 = arith.constant 0 : index
    %c0_110 = arith.constant 0 : index
    %c0_111 = arith.constant 0 : index
    %177 = vector.load %arg4[%c2_108, %c0_109, %c0_110, %c0_111] : memref<3x3x64x64xbf16, #tpu.memory_space<vmem>>, vector<1x1x64x64xbf16>
    %178 = vector.shape_cast %177 : vector<1x1x64x64xbf16> to vector<64x64xbf16>
    %cst_112 = arith.constant dense<0.000000e+00> : vector<64x256xf32>
    %179 = tpu.matmul %178, %176, %cst_112 {dimension_numbers = #tpu.dot_dimension_numbers<[1], [0], [0], [1], [0, 0, 1, 1], [], []>} : vector<64x64xbf16>, vector<64x256xbf16>, vector<64x256xf32> -> vector<64x256xf32>
    %180 = arith.addf %169, %179 : vector<64x256xf32>
    %cst_113 = arith.constant 0.000000e+00 : bf16
    %181 = vector.broadcast %cst_113 : bf16 to vector<64x16xbf16>
    %182 = vector.extract_strided_slice %113 {offsets = [0, 16], sizes = [64, 240], strides = [1, 1]} : vector<64x256xbf16> to vector<64x240xbf16>
    %183 = tpu.concatenate %182, %181 in 1 : vector<64x240xbf16>, vector<64x16xbf16> -> vector<64x256xbf16>
    %c2_114 = arith.constant 2 : index
    %c1_115 = arith.constant 1 : index
    %c0_116 = arith.constant 0 : index
    %c0_117 = arith.constant 0 : index
    %184 = vector.load %arg4[%c2_114, %c1_115, %c0_116, %c0_117] : memref<3x3x64x64xbf16, #tpu.memory_space<vmem>>, vector<1x1x64x64xbf16>
    %185 = vector.shape_cast %184 : vector<1x1x64x64xbf16> to vector<64x64xbf16>
    %cst_118 = arith.constant dense<0.000000e+00> : vector<64x256xf32>
    %186 = tpu.matmul %185, %183, %cst_118 {dimension_numbers = #tpu.dot_dimension_numbers<[1], [0], [0], [1], [0, 0, 1, 1], [], []>} : vector<64x64xbf16>, vector<64x256xbf16>, vector<64x256xf32> -> vector<64x256xf32>
    %187 = arith.addf %180, %186 : vector<64x256xf32>
    %cst_119 = arith.constant 0.000000e+00 : bf16
    %188 = vector.broadcast %cst_119 : bf16 to vector<64x17xbf16>
    %189 = vector.extract_strided_slice %113 {offsets = [0, 17], sizes = [64, 239], strides = [1, 1]} : vector<64x256xbf16> to vector<64x239xbf16>
    %190 = tpu.concatenate %189, %188 in 1 : vector<64x239xbf16>, vector<64x17xbf16> -> vector<64x256xbf16>
    %cst_120 = arith.constant 0.000000e+00 : bf16
    %191 = vector.broadcast %cst_120 : bf16 to vector<64x256xbf16>
    %192 = vector.shape_cast %20 : vector<1x256xi1> to vector<1x256xi1>
    %193 = vector.broadcast %192 : vector<1x256xi1> to vector<64x256xi1>
    %194 = arith.select %193, %190, %191 : vector<64x256xi1>, vector<64x256xbf16>
    %c2_121 = arith.constant 2 : index
    %c2_122 = arith.constant 2 : index
    %c0_123 = arith.constant 0 : index
    %c0_124 = arith.constant 0 : index
    %195 = vector.load %arg4[%c2_121, %c2_122, %c0_123, %c0_124] : memref<3x3x64x64xbf16, #tpu.memory_space<vmem>>, vector<1x1x64x64xbf16>
    %196 = vector.shape_cast %195 : vector<1x1x64x64xbf16> to vector<64x64xbf16>
    %cst_125 = arith.constant dense<0.000000e+00> : vector<64x256xf32>
    %197 = tpu.matmul %196, %194, %cst_125 {dimension_numbers = #tpu.dot_dimension_numbers<[1], [0], [0], [1], [0, 0, 1, 1], [], []>} : vector<64x64xbf16>, vector<64x256xbf16>, vector<64x256xf32> -> vector<64x256xf32>
    %198 = arith.addf %187, %197 : vector<64x256xf32>
    %c0_126 = arith.constant 0 : index
    %c0_127 = arith.constant 0 : index
    %199 = vector.load %arg5[%c0_126, %c0_127] : memref<64x1xf32, #tpu.memory_space<vmem>>, vector<64x1xf32>
    %200 = vector.broadcast %199 : vector<64x1xf32> to vector<64x256xf32>
    %201 = arith.addf %198, %200 : vector<64x256xf32>
    %202 = vector.shape_cast %201 : vector<64x256xf32> to vector<1x64x256xf32>
    %c0_128 = arith.constant 0 : index
    %c0_129 = arith.constant 0 : index
    %c0_130 = arith.constant 0 : index
    %203 = vector.load %arg6[%c0_128, %c0_129, %c0_130] : memref<1x64x256xf32, #tpu.memory_space<vmem>>, vector<1x64x256xf32>
    tpu.vector_store %arg6[%c0_128, %c0_129, %c0_130], %202 {strides = array<i32>} : memref<1x64x256xf32, #tpu.memory_space<vmem>>, vector<1x64x256xf32>,
    return
  }
  func.func @transform_0(%arg0: i32) -> (i32, i32, i32) {
    %c0_i32 = arith.constant 0 : i32
    %c0_i32_0 = arith.constant 0 : i32
    %c0_i32_1 = arith.constant 0 : i32
    return %arg0, %c0_i32, %c0_i32_0 : i32, i32, i32
  }
  func.func @transform_1(%arg0: i32) -> (i32, i32, i32, i32) {
    %c0_i32 = arith.constant 0 : i32
    %c0_i32_0 = arith.constant 0 : i32
    %c0_i32_1 = arith.constant 0 : i32
    %c0_i32_2 = arith.constant 0 : i32
    %c0_i32_3 = arith.constant 0 : i32
    return %c0_i32, %c0_i32_0, %c0_i32_1, %c0_i32_2 : i32, i32, i32, i32
  }
  func.func @transform_2(%arg0: i32) -> (i32, i32) {
    %c0_i32 = arith.constant 0 : i32
    %c0_i32_0 = arith.constant 0 : i32
    %c0_i32_1 = arith.constant 0 : i32
    return %c0_i32, %c0_i32_0 : i32, i32
  }
  func.func @transform_3(%arg0: i32) -> (i32, i32, i32, i32) {
    %c0_i32 = arith.constant 0 : i32
    %c0_i32_0 = arith.constant 0 : i32
    %c0_i32_1 = arith.constant 0 : i32
    %c0_i32_2 = arith.constant 0 : i32
    %c0_i32_3 = arith.constant 0 : i32
    return %c0_i32, %c0_i32_0, %c0_i32_1, %c0_i32_2 : i32, i32, i32, i32
  }
  func.func @transform_4(%arg0: i32) -> (i32, i32) {
    %c0_i32 = arith.constant 0 : i32
    %c0_i32_0 = arith.constant 0 : i32
    %c0_i32_1 = arith.constant 0 : i32
    return %c0_i32, %c0_i32_0 : i32, i32
  }
  func.func @transform_5(%arg0: i32) -> (i32, i32, i32) {
    %c0_i32 = arith.constant 0 : i32
    %c0_i32_0 = arith.constant 0 : i32
    %c0_i32_1 = arith.constant 0 : i32
    return %arg0, %c0_i32, %c0_i32_0 : i32, i32, i32
  }
}

</mosaic_0001>

<bundles_post_ra>
// kernel: enlayer_forward.1
= control target key start
LH: loop header
LB: loop body
LE: loop exit
PB: predicated region body
PF: predicated region fallthrough
CT: control target
= control target key end

     0   :  { %s4305_s18 = smov 0   ;;  %s5431_s0 = inlined_call_operand.vmem [shape: bf16[2,64,256], index: 0, kind: input, shape index: {}]   ;;  %s5432_s1 = inlined_call_operand.vmem [shape: bf16[3,3,64,64], index: 1, kind: input, shape index: {}]   ;;  %s5433_s2 = inlined_call_operand.vmem [shape: f32[64,1], index: 2, kind: input, shape index: {}]   ;;  %s5434_s3 = inlined_call_operand.vmem [shape: bf16[3,3,64,64], index: 3, kind: input, shape index: {}]   ;;  %s5435_s4 = inlined_call_operand.vmem [shape: f32[64,1], index: 4, kind: input, shape index: {}]   ;;  %s5436_s5 = inlined_call_operand.vmem [shape: f32[2,64,256], index: 5, kind: output, shape index: {}]  }
   0x1 LB: > { %s3534_s19 = sadd.s32 4294967295, %s4264_s18   ;;  %p3538_p0 = scmp.ge.s32.totalorder %s4264_s18, 1  ;;  %s4264_s18 = sphi %s4305_s18, %s15_s18  }
   0x2   : > { %p187_p1 = scmp.lt.s32.totalorder %s4264_s18, 3 }
   0x4   : > { %p188_p2 = pnand %p3538_p0, %p187_p1 }
   0x5   : > { %p215_p3 = scmp.lt.s32.totalorder (!%p188_p2), %s3534_s19, 1  ;;  %s4266_s24 = smov (!%p188_p2), 16   ;;  %v4267_v8 = vmov (!%p188_p2), 0   ;;  %v228_v9 = vlaneseq (!%p188_p2)  ;;  %vm386_vm0 = vcmask (!%p188_p2), 130048   ;;  %vm315_vm5 = vcmask (!%p188_p2), 138240   ;;  %v4186_v39 = vld [vmem:[%s5432_s1 + $0x20] sm:$0xff] (!%p188_p2)  }
   0x6   : > { %191 = sbr.rel (%p188_p2) target bundleno = 1272 (0x4f8), region = 40  ;;  %482 = vmatprep.mubr.bf16.mxu0 (!%p188_p2), %v4267_v8  ;;  %4172 = vset.pattern.permute.xlu0 (!%p188_p2), %v4267_v8  ;;  %s4268_s25 = smov (!%p188_p2), 17   ;;  %vm4460_vm1 = vmneg (!%p188_p2), %vm386_vm0  ;;  %vm437_vm8 = vcmask (!%p188_p2), 523264   ;;  %v4187_v51 = vld [vmem:[%s5432_s1 + $0x28] sm:$0xff] (!%p188_p2)   ;;  %vm644_vm12 = vcmask (!%p188_p2), 121856   ;;  %v4188_v63 = vld [vmem:[%s5432_s1 + $0x30] sm:$0xff] (!%p188_p2)  }
   0x7   : > { %2087 = vmatprep.mubr.bf16.mxu1 (!%p188_p2), %v4267_v8  ;;  %4173 = vset.pattern.permute.xlu1 (!%p188_p2), %v4267_v8  ;;  %s4269_s26 = smov (!%p188_p2), 15   ;;  %s4270_s27 = smov (!%p188_p2), 1   ;;  %v229_v10 = vand.u32 (!%p188_p2), 127, %v228_v9  ;;  %v4473_v22 = vshrl.u32 (!%p188_p2), %v228_v9, 7  ;;  %v4189_v9 = vld [vmem:[%s5432_s1 + $0x38] sm:$0xff] (!%p188_p2)   ;;  %vm836_vm15 = vcmask (!%p188_p2), 7168  }
   0x8   : > { %s4271_s28 = smov (!%p188_p2), 127   ;;  %s4272_s29 = smov (!%p188_p2), 113   ;;  %v3403_v18 = vld [vmem:[%s5435_s4 + $0x20] sm:$0xff] (!%p188_p2) }
   0x9   : > { %s4273_s30 = smov (!%p188_p2), 112   ;;  %v230_v11 = vadd.s32 (!%p188_p2), 128, %v229_v10  ;;  %s4274_s6 = smov (!%p188_p2), 111   ;;  %v235_v14 = vand.u32 (!%p188_p2), 15, %v229_v10  ;;  %v346_v27 = vsub.s32 (!%p188_p2), 0, %v4473_v22  ;;  %v350_v28 = vsub.s32 (!%p188_p2), 4, %v4473_v22 }
   0xb   : > { %v242_v15 = vand.u32 (!%p188_p2), 15, %v230_v11  ;;  %vm4464_vm2 = vcmp.ge.s32.totalorder (!%p188_p2), %v235_v14, 1  ;;  %vm4518_vm9 = vcmp.le.s32.totalorder (!%p188_p2), %v235_v14, 14  ;;  %v4190_v14 = vld [vmem:[%s5432_s1] sm:$0xff] (!%p188_p2)  }
   0xd   : > { %s5446_s19 = smov (!%p215_p3, %s3534_s19), 1  ;;  %vm4468_vm3 = vcmp.ge.s32.totalorder %v242_v15, 1  ;;  %vm258_vm10 = vcmp.le.s32.totalorder %v242_v15, 14 }
   0xe   : > { %s3897_s20 = sshll.u32 %s5446_s19, 6  ;;  %vm342_vm4 = vmpackc.low %vm4468_vm3, %vm4464_vm2  ;;  %vm1150_vm2 = vcmask 1039360   ;;  %vm1326_vm3 = vcmask 924672   ;;  %s3898_s16 = sshll.u32 %s5446_s19, 7 }
   0xf   : > { %s219_s23 = scalar_lea.vmem %s5431_s0, %s3897_s20  ;;  %v343_v29 = vsel %vm342_vm4, 65537, %v4267_v8  ;;  %vm670_vm11 = vmpackc.low %vm258_vm10, %vm4518_vm9  ;;  %vm1502_vm4 = vcmask 916480   ;;  %vm1670_vm9 = vcmask 908288   ;;  %s5410_s21 = scalar_lea.vmem %s5436_s5, %s3898_s16 }
  0x10   : > { %v4319_v0 = vld [vmem:[%s219_s23 + $0x10] ss:$8 sps:$4 sm:$0xff]   ;;  %v4321_v1 = vld [vmem:[%s219_s23] ss:$8 sps:$4 sm:$0xff]   ;;  %v4325_v2 = vld [vmem:[%s219_s23 + $0x14] ss:$8 sps:$4 sm:$0xff]   ;;  %v4499_v33 = vrot.slane %v343_v29, %v346_v27  ;;  %v4501_v34 = vrot.slane %v343_v29, %v350_v28 }
  0x11   : > { %374 = vrot.lane.b32.xlu1 %v4319_v0, %s4266_s24  ;;  %370 = vrot.lane.b32.xlu0 %v4321_v1, %s4266_s24  ;;  %v4329_v3 = vld [vmem:[%s219_s23 + $0x4] ss:$8 sps:$4 sm:$0xff]   ;;  %v4333_v5 = vld [vmem:[%s219_s23 + $0x20] ss:$8 sps:$4 sm:$0xff]   ;;  %v671_v52 = vsel %vm670_vm11, 65537, %v4267_v8 }
  0x12   : > { %v4331_v4 = vld [vmem:[%s219_s23 + $0x24] ss:$8 sps:$4 sm:$0xff]   ;;  %v4339_v6 = vld [vmem:[%s219_s23 + $0x34] ss:$8 sps:$4 sm:$0xff]   ;;  %v4341_v7 = vld [vmem:[%s219_s23 + $0x30] ss:$8 sps:$4 sm:$0xff]   ;;  %v4544_v58 = vrot.slane %v671_v52, %v350_v28  ;;  %v4566_v10 = vrot.slane %v671_v52, %v346_v27 }
  0x13   : > { %vm352_vm6 = vcmp.ne.s16.totalorder %v4499_v33, 0  ;;  %vm353_vm7 = vcmp.ne.s16.totalorder %v4501_v34, 0  ;;  %v4245_v34 = vld [vmem:[%s5434_s3 + $0xb8] sm:$0xff]   ;;  %v4246_v33 = vld [vmem:[%s5434_s3 + $0xc0] sm:$0xff]  }
  0x14   : > { %vm681_vm13 = vcmp.ne.s16.totalorder %v4544_v58, 0  ;;  %vm680_vm14 = vcmp.ne.s16.totalorder %v4566_v10, 0  ;;  %v4254_v58 = vld [vmem:[%s5434_s3 + $0x100] sm:$0xff]   ;;  %v4255_v10 = vld [vmem:[%s5434_s3 + $0x108] sm:$0xff]  }
  0x15   : > { %376 = vrot.lane.b32.xlu1 %v4325_v2, %s4266_s24  ;;  %372 = vrot.lane.b32.xlu0 %v4329_v3, %s4266_s24 }
  0x19   : > { %380 = vrot.lane.b32.xlu1 %v4331_v4, %s4266_s24  ;;  %378 = vrot.lane.b32.xlu0 %v4333_v5, %s4266_s24 }
  0x1d   : > { %384 = vrot.lane.b32.xlu1 %v4339_v6, %s4266_s24  ;;  %382 = vrot.lane.b32.xlu0 %v4341_v7, %s4266_s24 }
  0x21   : > { %301 = vrot.lane.b32.xlu1 %v4329_v3, %s4268_s25  ;;  %299 = vrot.lane.b32.xlu0 %v4321_v1, %s4268_s25 }
  0x25   : > { %305 = vrot.lane.b32.xlu1 %v4325_v2, %s4268_s25  ;;  %303 = vrot.lane.b32.xlu0 %v4319_v0, %s4268_s25 }
  0x29   : > { %309 = vrot.lane.b32.xlu1 %v4331_v4, %s4268_s25  ;;  %307 = vrot.lane.b32.xlu0 %v4333_v5, %s4268_s25 }
  0x2d   : > { %313 = vrot.lane.b32.xlu1 %v4339_v6, %s4268_s25  ;;  %311 = vrot.lane.b32.xlu0 %v4341_v7, %s4268_s25 }
  0x31   : > { %630 = vrot.lane.b32.xlu1 %v4329_v3, %s4269_s26  ;;  %628 = vrot.lane.b32.xlu0 %v4321_v1, %s4269_s26 }
  0x35   : > { %634 = vrot.lane.b32.xlu1 %v4325_v2, %s4269_s26  ;;  %632 = vrot.lane.b32.xlu0 %v4319_v0, %s4269_s26 }
  0x39   : > { %638 = vrot.lane.b32.xlu1 %v4331_v4, %s4269_s26  ;;  %636 = vrot.lane.b32.xlu0 %v4333_v5, %s4269_s26 }
  0x3d   : > { %642 = vrot.lane.b32.xlu1 %v4339_v6, %s4269_s26  ;;  %640 = vrot.lane.b32.xlu0 %v4341_v7, %s4269_s26 }
  0x41   : > { %822 = vrot.lane.b32.xlu1 %v4329_v3, %s4270_s27  ;;  %820 = vrot.lane.b32.xlu0 %v4321_v1, %s4270_s27 }
  0x45   : > { %826 = vrot.lane.b32.xlu1 %v4325_v2, %s4270_s27  ;;  %824 = vrot.lane.b32.xlu0 %v4319_v0, %s4270_s27 }
  0x49   : > { %830 = vrot.lane.b32.xlu1 %v4331_v4, %s4270_s27  ;;  %828 = vrot.lane.b32.xlu0 %v4333_v5, %s4270_s27 }
  0x4d   : > { %834 = vrot.lane.b32.xlu1 %v4339_v6, %s4270_s27  ;;  %832 = vrot.lane.b32.xlu0 %v4341_v7, %s4270_s27 }
  0x51   : > { %1136 = vrot.lane.b32.xlu1 %v4329_v3, %s4271_s28  ;;  %1134 = vrot.lane.b32.xlu0 %v4321_v1, %s4271_s28 }
  0x55   : > { %1140 = vrot.lane.b32.xlu1 %v4325_v2, %s4271_s28  ;;  %1138 = vrot.lane.b32.xlu0 %v4319_v0, %s4271_s28 }
  0x59   : > { %1144 = vrot.lane.b32.xlu1 %v4331_v4, %s4271_s28  ;;  %1142 = vrot.lane.b32.xlu0 %v4333_v5, %s4271_s28 }
  0x5d   : > { %1148 = vrot.lane.b32.xlu1 %v4339_v6, %s4271_s28  ;;  %1146 = vrot.lane.b32.xlu0 %v4341_v7, %s4271_s28 }
  0x61   : > { %1312 = vrot.lane.b32.xlu1 %v4329_v3, %s4272_s29  ;;  %1310 = vrot.lane.b32.xlu0 %v4321_v1, %s4272_s29 }
  0x65   : > { %1316 = vrot.lane.b32.xlu1 %v4325_v2, %s4272_s29  ;;  %1314 = vrot.lane.b32.xlu0 %v4319_v0, %s4272_s29 }
  0x69   : > { %1320 = vrot.lane.b32.xlu1 %v4331_v4, %s4272_s29  ;;  %1318 = vrot.lane.b32.xlu0 %v4333_v5, %s4272_s29 }
  0x6d   : > { %1324 = vrot.lane.b32.xlu1 %v4339_v6, %s4272_s29  ;;  %1322 = vrot.lane.b32.xlu0 %v4341_v7, %s4272_s29 }
  0x71   : > { %1488 = vrot.lane.b32.xlu1 %v4329_v3, %s4273_s30  ;;  %1486 = vrot.lane.b32.xlu0 %v4321_v1, %s4273_s30 }
  0x75   : > { %1492 = vrot.lane.b32.xlu1 %v4325_v2, %s4273_s30  ;;  %1490 = vrot.lane.b32.xlu0 %v4319_v0, %s4273_s30 }
  0x79   : > { %1496 = vrot.lane.b32.xlu1 %v4331_v4, %s4273_s30  ;;  %1494 = vrot.lane.b32.xlu0 %v4333_v5, %s4273_s30 }
  0x7d   : > { %1500 = vrot.lane.b32.xlu1 %v4339_v6, %s4273_s30  ;;  %1498 = vrot.lane.b32.xlu0 %v4341_v7, %s4273_s30 }
  0x81   : > { %1656 = vrot.lane.b32.xlu1 %v4329_v3, %s4274_s6  ;;  %1654 = vrot.lane.b32.xlu0 %v4321_v1, %s4274_s6 }
  0x83   : > { %v375_v12 = vpop.permute.xlu1 %374  ;;  %v371_v13 = vpop.permute.xlu0 %370 }
  0x85   : > { %1660 = vrot.lane.b32.xlu1 %v4325_v2, %s4274_s6  ;;  %1658 = vrot.lane.b32.xlu0 %v4319_v0, %s4274_s6 }
  0x87   : > { %v377_v16 = vpop.permute.xlu1 %376  ;;  %v373_v17 = vpop.permute.xlu0 %372 }
  0x88   : > { %v387_v21 = vsel %vm386_vm0, %v371_v13, %v373_v17  ;;  %v388_v23 = vsel %vm386_vm0, %v375_v12, %v377_v16 }
  0x89   : > { %450 = vmatprep.subr.bf16.mxu0 %v387_v21  ;;  %1664 = vrot.lane.b32.xlu1 %v4331_v4, %s4274_s6 }
  0x8a   : > { %3564 = vmatpush1.bf16.msk.msra.mxu0 %vm4460_vm1, %v371_v13  ;;  %1662 = vrot.lane.b32.xlu0 %v4333_v5, %s4274_s6 }
  0x8b   : > { %v381_v24 = vpop.permute.xlu1 %380  ;;  %452 = vmatprep.subr.bf16.mxu0 %v388_v23  ;;  %v379_v25 = vpop.permute.xlu0 %378 }
  0x8c   : > { %v389_v26 = vsel %vm386_vm0, %v379_v25, %v381_v24  ;;  %v4191_v24 = vld [vmem:[%s5432_s1 + $0x8] sm:$0xff]  }
  0x8d   : > { %1668 = vrot.lane.b32.xlu1 %v4339_v6, %s4274_s6 }
  0x8e   : > { %3566 = vmatpush1.bf16.msk.msra.mxu0 %vm4460_vm1, %v375_v12  ;;  %1666 = vrot.lane.b32.xlu0 %v4341_v7, %s4274_s6 }
  0x8f   : > { %v385_v30 = vpop.permute.xlu1 %384  ;;  %454 = vmatprep.subr.bf16.mxu0 %v389_v26  ;;  %v383_v31 = vpop.permute.xlu0 %382 }
  0x90   : > { %v390_v32 = vsel %vm386_vm0, %v383_v31, %v385_v30 }
  0x92   : > { %3568 = vmatpush1.bf16.msk.msra.mxu0 %vm4460_vm1, %v379_v25 }
  0x93   : > { %v302_v35 = vpop.permute.xlu1 %301  ;;  %456 = vmatprep.subr.bf16.mxu0 %v390_v32  ;;  %v300_v36 = vpop.permute.xlu0 %299 }
  0x94   : > { %v327_v37 = vsel %vm315_vm5, 0, %v300_v36  ;;  %v316_v38 = vsel %vm315_vm5, %v300_v36, %v302_v35  ;;  %v4192_v36 = vld [vmem:[%s5432_s1 + $0x10] sm:$0xff]  }
  0x95   : > { %v354_v41 = vsel %vm352_vm6, %v327_v37, 0  ;;  %v4193_v37 = vld [vmem:[%s5432_s1 + $0x18] sm:$0xff]  }
  0x96   : > { %3570 = vmatpush1.bf16.msk.msra.mxu0 %vm4460_vm1, %v383_v31 }
  0x97   : > { %v306_v40 = vpop.permute.xlu1 %305  ;;  %3579 = vmatprep.subr.msk.bf16.mxu0 %vm353_vm7, %v316_v38  ;;  %v304_v42 = vpop.permute.xlu0 %303 }
  0x98   : > { %v330_v44 = vsel %vm315_vm5, 0, %v304_v42  ;;  %v317_v45 = vsel %vm315_vm5, %v304_v42, %v306_v40 }
  0x99   : > { %3571 = vmatmul.mubr.msk.bf16.vlgmr.msra.gmra.mrb[0].mxu0 %vm437_vm8, %v4186_v39  ;;  %v356_v47 = vsel %vm352_vm6, %v330_v44, 0 }
  0x9a   : > { %556 = vmatpush1.bf16.msra.mxu0 %v354_v41  ;;  %492 = vmatprep.mubr.bf16.mxu0 %v4267_v8  ;;  %v4194_v41 = vld [vmem:[%s5432_s1 + $0x40] sm:$0xff]  }
  0x9b   : > { %v310_v46 = vpop.permute.xlu1 %309  ;;  %3580 = vmatprep.subr.msk.bf16.mxu0 %vm353_vm7, %v317_v45  ;;  %v308_v48 = vpop.permute.xlu0 %307 }
  0x9c   : > { %v333_v49 = vsel %vm315_vm5, 0, %v308_v48  ;;  %v318_v50 = vsel %vm315_vm5, %v308_v48, %v310_v46 }
  0x9d   : > { %v358_v54 = vsel %vm352_vm6, %v333_v49, 0 }
  0x9e   : > { %558 = vmatpush1.bf16.msra.mxu0 %v356_v47 }
  0x9f   : > { %v314_v53 = vpop.permute.xlu1 %313  ;;  %3581 = vmatprep.subr.msk.bf16.mxu0 %vm353_vm7, %v318_v50  ;;  %v312_v55 = vpop.permute.xlu0 %311  ;;  %v4195_v50 = vld [vmem:[%s5432_s1 + $0x48] sm:$0xff]  }
  0xa0   : > { %v336_v56 = vsel %vm315_vm5, 0, %v312_v55  ;;  %v319_v57 = vsel %vm315_vm5, %v312_v55, %v314_v53 }
  0xa1   : > { %3572 = vmatmul.mubr.msk.bf16.gmra.mrb[4].mxu0 %vm437_vm8, %v4187_v51  ;;  %v360_v60 = vsel %vm352_vm6, %v336_v56, 0 }
  0xa2   : > { %502 = vmatprep.mubr.bf16.mxu0 %v4267_v8  ;;  %560 = vmatpush1.bf16.msra.mxu0 %v358_v54 }
  0xa3   : > { %v631_v59 = vpop.permute.xlu1 %630  ;;  %3582 = vmatprep.subr.msk.bf16.mxu0 %vm353_vm7, %v319_v57  ;;  %v629_v61 = vpop.permute.xlu0 %628  ;;  %v4196_v57 = vld [vmem:[%s5432_s1 + $0x50] sm:$0xff]  }
  0xa4   : > { %v645_v62 = vsel %vm644_vm12, %v629_v61, %v631_v59  ;;  %v655_v13 = vsel %vm644_vm12, 0, %v629_v61  ;;  %v4197_v59 = vld [vmem:[%s5432_s1 + $0x58] sm:$0xff]  }
  0xa5   : > { %v682_v15 = vsel %vm680_vm14, %v655_v13, 0 }
  0xa6   : > { %562 = vmatpush1.bf16.msra.mxu0 %v360_v60  ;;  %v4198_v60 = vld [vmem:[%s5432_s1 + $0x60] sm:$0xff]  }
  0xa7   : > { %3599 = vmatprep.subr.msk.bf16.mxu0 %vm681_vm13, %v645_v62  ;;  %v635_v11 = vpop.permute.xlu1 %634  ;;  %v633_v12 = vpop.permute.xlu0 %632  ;;  %v4202_v62 = vld [vmem:[%s5432_s1 + $0x80] sm:$0xff]  }
  0xa8   : > { %v658_v19 = vsel %vm644_vm12, 0, %v633_v12  ;;  %v646_v20 = vsel %vm644_vm12, %v633_v12, %v635_v11 }
  0xa9   : > { %3573 = vmatmul.mubr.msk.bf16.gmra.mrb[8].mxu0 %vm437_vm8, %v4188_v63  ;;  %v684_v21 = vsel %vm680_vm14, %v658_v19, 0 }
  0xaa   : > { %512 = vmatprep.mubr.bf16.mxu0 %v4267_v8 }
  0xab   : > { %v639_v16 = vpop.permute.xlu1 %638  ;;  %v637_v17 = vpop.permute.xlu0 %636 }
  0xac   : > { %v661_v22 = vsel %vm644_vm12, 0, %v637_v17  ;;  %v647_v23 = vsel %vm644_vm12, %v637_v17, %v639_v16  ;;  %v4203_v17 = vld [vmem:[%s5432_s1 + $0x88] sm:$0xff]  }
  0xad   : > { %v686_v27 = vsel %vm680_vm14, %v661_v22, 0 }
  0xaf   : > { %v643_v25 = vpop.permute.xlu1 %642  ;;  %v641_v26 = vpop.permute.xlu0 %640 }
  0xb0   : > { %v664_v28 = vsel %vm644_vm12, 0, %v641_v26  ;;  %v648_v29 = vsel %vm644_vm12, %v641_v26, %v643_v25 }
  0xb1   : > { %3574 = vmatmul.mubr.msk.bf16.gmra.mrb[12].mxu0 %vm437_vm8, %v4189_v9  ;;  %v688_v32 = vsel %vm680_vm14, %v664_v28, 0 }
  0xb2   : > { %587 = vmatprep.mubr.bf16.mxu0 %v4267_v8 }
  0xb3   : > { %v823_v30 = vpop.permute.xlu1 %822  ;;  %v821_v31 = vpop.permute.xlu0 %820 }
  0xb4   : > { %v837_v35 = vsel %vm836_vm15, %v821_v31, %v823_v30  ;;  %v847_v40 = vsel %vm836_vm15, 0, %v821_v31 }
  0xb5   : > { %v858_v42 = vsel %vm352_vm6, %v847_v40, 0 }
  0xb7   : > { %v827_v38 = vpop.permute.xlu1 %826  ;;  %v825_v39 = vpop.permute.xlu0 %824 }
  0xb8   : > { %v850_v45 = vsel %vm836_vm15, 0, %v825_v39  ;;  %v838_v46 = vsel %vm836_vm15, %v825_v39, %v827_v38  ;;  %v1832_v38 = vld [vmem:[%s5433_s2 + $0x10] sm:$0xff]  ;;  %v4206_v39 = vld [vmem:[%s5432_s1 + $0xa0] sm:$0xff]  }
  0xb9   : > { %3583 = vmatmul.mubr.msk.bf16.vlgmr.msra.gmra.mrb[0].mxu0 %vm437_vm8, %v4190_v14  ;;  %v860_v47 = vsel %vm352_vm6, %v850_v45, 0  ;;  %v1834_v45 = vld [vmem:[%s5433_s2 + $0x20] sm:$0xff] }
  0xba   : > { %732 = vmatpush1.bf16.msra.mxu0 %v682_v15  ;;  %597 = vmatprep.mubr.bf16.mxu0 %v4267_v8 }
  0xbb   : > { %3600 = vmatprep.subr.msk.bf16.mxu0 %vm681_vm13, %v646_v20  ;;  %v831_v43 = vpop.permute.xlu1 %830  ;;  %v829_v44 = vpop.permute.xlu0 %828 }
  0xbc   : > { %v853_v48 = vsel %vm836_vm15, 0, %v829_v44  ;;  %v839_v49 = vsel %vm836_vm15, %v829_v44, %v831_v43 }
  0xbd   : > { %v862_v53 = vsel %vm352_vm6, %v853_v48, 0 }
  0xbe   : > { %734 = vmatpush1.bf16.msra.mxu0 %v684_v21 }
  0xbf   : > { %3601 = vmatprep.subr.msk.bf16.mxu0 %vm681_vm13, %v647_v23  ;;  %v835_v51 = vpop.permute.xlu1 %834  ;;  %v833_v52 = vpop.permute.xlu0 %832 }
  0xc0   : > { %v856_v54 = vsel %vm836_vm15, 0, %v833_v52  ;;  %v840_v55 = vsel %vm836_vm15, %v833_v52, %v835_v51  ;;  %v4207_v51 = vld [vmem:[%s5432_s1 + $0xa8] sm:$0xff]  }
  0xc1   : > { %3584 = vmatmul.mubr.msk.bf16.gmra.mrb[4].mxu0 %vm437_vm8, %v4191_v24  ;;  %v864_v56 = vsel %vm352_vm6, %v856_v54, 0  ;;  %v1837_v54 = vld [vmem:[%s5433_s2 + $0x38] sm:$0xff] }
  0xc2   : > { %607 = vmatprep.mubr.bf16.mxu0 %v4267_v8  ;;  %736 = vmatpush1.bf16.msra.mxu0 %v686_v27  ;;  %v4204_v27 = vld [vmem:[%s5432_s1 + $0x90] sm:$0xff]  }
  0xc3   : > { %3602 = vmatprep.subr.msk.bf16.mxu0 %vm681_vm13, %v648_v29  ;;  %v1137_v61 = vpop.permute.xlu1 %1136  ;;  %v4205_v29 = vld [vmem:[%s5432_s1 + $0x98] sm:$0xff]  }
  0xc6   : > { %738 = vmatpush1.bf16.msra.mxu0 %v688_v32  ;;  %v1830_v32 = vld [vmem:[%s5433_s2] sm:$0xff] }
  0xc7   : > { %3619 = vmatprep.subr.msk.bf16.mxu0 %vm353_vm7, %v837_v35  ;;  %v1831_v35 = vld [vmem:[%s5433_s2 + $0x8] sm:$0xff]  ;;  %1840 = vperm.xlu0 %4172, %v1830_v32  }
  0xc8   : > { %1845 = vperm.xlu1 %4173, %v1831_v35   ;;  %v4215_v32 = vld [vmem:[%s5432_s1 + $0xe8] sm:$0xff]  }
  0xc9   : > { %3585 = vmatmul.mubr.msk.bf16.gmra.mrb[8].mxu0 %vm437_vm8, %v4192_v36  ;;  %v1833_v36 = vld [vmem:[%s5433_s2 + $0x18] sm:$0xff] }
  0xca   : > { %617 = vmatprep.mubr.bf16.mxu0 %v4267_v8 }
  0xcb   : > { %1855 = vperm.xlu0 %4172, %v1833_v36  }
  0xcc   : > { %1850 = vperm.xlu1 %4173, %v1832_v38  }
  0xd0   : > { %1860 = vperm.xlu1 %4173, %v1834_v45   ;;  %v4220_v45 = vld [vmem:[%s5432_s1 + $0x110] sm:$0xff]  }
  0xd1   : > { %3586 = vmatmul.mubr.msk.bf16.gmra.mrb[12].mxu0 %vm437_vm8, %v4193_v37 }
  0xd2   : > { %763 = vmatprep.mubr.bf16.mxu0 %v4267_v8 }
  0xd9   : > { %3603 = vmatmul.mubr.msk.bf16.vlgmr.msra.gmra.mrb[0].mxu0 %vm437_vm8, %v4194_v41 }
  0xda   : > { %908 = vmatpush1.bf16.msra.mxu0 %v858_v42  ;;  %773 = vmatprep.mubr.bf16.mxu0 %v4267_v8 }
  0xdb   : > { %3620 = vmatprep.subr.msk.bf16.mxu0 %vm353_vm7, %v838_v46  ;;  %v1835_v46 = vld [vmem:[%s5433_s2 + $0x28] sm:$0xff] }
  0xdc   : > { %1865 = vperm.xlu0 %4172, %v1835_v46   ;;  %v4221_v46 = vld [vmem:[%s5432_s1 + $0x118] sm:$0xff]  }
  0xde   : > { %910 = vmatpush1.bf16.msra.mxu0 %v860_v47 }
  0xdf   : > { %3621 = vmatprep.subr.msk.bf16.mxu0 %vm353_vm7, %v839_v49 }
  0xe0   : > { %1875 = vperm.xlu0 %4172, %v1837_v54  }
  0xe1   : > { %3604 = vmatmul.mubr.msk.bf16.gmra.mrb[4].mxu0 %vm437_vm8, %v4195_v50  ;;  %v1836_v50 = vld [vmem:[%s5433_s2 + $0x30] sm:$0xff] }
  0xe2   : > { %783 = vmatprep.mubr.bf16.mxu0 %v4267_v8  ;;  %912 = vmatpush1.bf16.msra.mxu0 %v862_v53 }
  0xe3   : > { %3622 = vmatprep.subr.msk.bf16.mxu0 %vm353_vm7, %v840_v55  ;;  %1870 = vperm.xlu1 %4173, %v1836_v50  }
  0xe6   : > { %914 = vmatpush1.bf16.msra.mxu0 %v864_v56 }
  0xe7   : > { %1045 = vmatprep.subr.bf16.mxu0 %v4329_v3  ;;  %v4199_v3 = vld [vmem:[%s5432_s1 + $0x68] sm:$0xff]  }
  0xe9   : > { %3605 = vmatmul.mubr.msk.bf16.gmra.mrb[8].mxu0 %vm437_vm8, %v4196_v57 }
  0xea   : > { %793 = vmatprep.mubr.bf16.mxu0 %v4267_v8 }
  0xf1   : > { %3606 = vmatmul.mubr.msk.bf16.gmra.mrb[12].mxu0 %vm437_vm8, %v4197_v59 }
  0xf2   : > { %939 = vmatprep.mubr.bf16.mxu0 %v4267_v8 }
  0xf9   : > { %3623 = vmatmul.mubr.msk.bf16.vlgmr.msra.gmra.mrb[0].mxu0 %vm437_vm8, %v4198_v60 }
  0xfa   : > { %1046 = vmatpush1.bf16.msra.mxu0 %v4321_v1  ;;  %949 = vmatprep.mubr.bf16.mxu0 %v4267_v8  ;;  %v1161_v1 = vsel %vm1150_vm2, %v1137_v61, 0 }
  0xfb   : > { %1047 = vmatprep.subr.bf16.mxu0 %v4325_v2  ;;  %v4200_v2 = vld [vmem:[%s5432_s1 + $0x70] sm:$0xff]  }
  0xfe   : > { %1048 = vmatpush1.bf16.msra.mxu0 %v4319_v0  ;;  %v1135_v0 = vpop.permute.xlu0 %1134 }
  0xff   : > { %1049 = vmatprep.subr.bf16.mxu0 %v4331_v4  ;;  %v4201_v4 = vld [vmem:[%s5432_s1 + $0x78] sm:$0xff]  }
 0x101   : > { %3624 = vmatmul.mubr.msk.bf16.gmra.mrb[4].mxu0 %vm437_vm8, %v4199_v3  ;;  %v4208_v3 = vld [vmem:[%s5432_s1 + $0xb0] sm:$0xff]  }
 0x102   : > { %959 = vmatprep.mubr.bf16.mxu0 %v4267_v8  ;;  %1050 = vmatpush1.bf16.msra.mxu0 %v4333_v5  ;;  %v1141_v5 = vpop.permute.xlu1 %1140 }
 0x103   : > { %1051 = vmatprep.subr.bf16.mxu0 %v4339_v6  ;;  %v1139_v6 = vpop.permute.xlu0 %1138  ;;  %v1164_v13 = vsel %vm1150_vm2, %v1141_v5, 0 }
 0x104   : > { %v1152_v12 = vsel %vm1150_vm2, %v1139_v6, %v1141_v5 }
 0x105   : > { %v1174_v14 = vsel %vm680_vm14, %v1152_v12, 0 }
 0x106   : > { %1052 = vmatpush1.bf16.msra.mxu0 %v4341_v7  ;;  %v1151_v7 = vsel %vm1150_vm2, %v1135_v0, %v1137_v61  ;;  %v1145_v9 = vpop.permute.xlu1 %1144  ;;  %v4209_v61 = vld [vmem:[%s5432_s1 + $0xb8] sm:$0xff]  }
 0x107   : > { %3655 = vmatprep.subr.msk.bf16.mxu0 %vm681_vm13, %v1161_v1  ;;  %v1172_v63 = vsel %vm680_vm14, %v1151_v7, 0  ;;  %v1143_v11 = vpop.permute.xlu0 %1142  ;;  %v1167_v16 = vsel %vm1150_vm2, %v1145_v9, 0 }
 0x108   : > { %v1153_v15 = vsel %vm1150_vm2, %v1143_v11, %v1145_v9 }
 0x109   : > { %3625 = vmatmul.mubr.msk.bf16.gmra.mrb[8].mxu0 %vm437_vm8, %v4200_v2  ;;  %v1176_v21 = vsel %vm680_vm14, %v1153_v15, 0 }
 0x10a   : > { %969 = vmatprep.mubr.bf16.mxu0 %v4267_v8  ;;  %v1149_v19 = vpop.permute.xlu1 %1148 }
 0x10b   : > { %v1147_v20 = vpop.permute.xlu0 %1146  ;;  %v1170_v23 = vsel %vm1150_vm2, %v1149_v19, 0 }
 0x10c   : > { %v1154_v22 = vsel %vm1150_vm2, %v1147_v20, %v1149_v19  ;;  %v4213_v19 = vld [vmem:[%s5432_s1 + $0xd8] sm:$0xff]  }
 0x10d   : > { %v1178_v25 = vsel %vm680_vm14, %v1154_v22, 0 }
 0x10e   : > { %v1313_v24 = vpop.permute.xlu1 %1312 }
 0x10f   : > { %v1337_v26 = vsel %vm1326_vm3, %v1313_v24, 0  ;;  %v1311_v28 = vpop.permute.xlu0 %1310 }
 0x110   : > { %v1327_v37 = vsel %vm1326_vm3, %v1311_v28, %v1313_v24 }
 0x111   : > { %3626 = vmatmul.mubr.msk.bf16.gmra.mrb[12].mxu0 %vm437_vm8, %v4201_v4  ;;  %v1348_v40 = vsel %vm352_vm6, %v1327_v37, 0  ;;  %v4210_v4 = vld [vmem:[%s5432_s1 + $0xc0] sm:$0xff]  }
 0x112   : > { %1077 = vmatprep.mubr.bf16.mxu0 %v4267_v8  ;;  %v1317_v30 = vpop.permute.xlu1 %1316 }
 0x113   : > { %v1315_v31 = vpop.permute.xlu0 %1314  ;;  %v1340_v44 = vsel %vm1326_vm3, %v1317_v30, 0 }
 0x114   : > { %v1328_v43 = vsel %vm1326_vm3, %v1315_v31, %v1317_v30 }
 0x115   : > { %v1350_v47 = vsel %vm352_vm6, %v1328_v43, 0  ;;  %v4218_v43 = vld [vmem:[%s5432_s1 + $0x100] sm:$0xff]  }
 0x116   : > { %v1321_v41 = vpop.permute.xlu1 %1320 }
 0x117   : > { %v1319_v42 = vpop.permute.xlu0 %1318  ;;  %v1343_v49 = vsel %vm1326_vm3, %v1321_v41, 0 }
 0x118   : > { %v1329_v48 = vsel %vm1326_vm3, %v1319_v42, %v1321_v41  ;;  %v4216_v41 = vld [vmem:[%s5432_s1 + $0xf0] sm:$0xff]   ;;  %v4217_v42 = vld [vmem:[%s5432_s1 + $0xf8] sm:$0xff]  }
 0x119   : > { %3639 = vmatmul.mubr.msk.bf16.vlgmr.msra.gmra.mrb[0].mxu0 %vm437_vm8, %v4202_v62  ;;  %v1352_v55 = vsel %vm352_vm6, %v1329_v48, 0 }
 0x11a   : > { %1222 = vmatpush1.bf16.msra.mxu0 %v1172_v63  ;;  %1087 = vmatprep.mubr.bf16.mxu0 %v4267_v8  ;;  %v1325_v52 = vpop.permute.xlu1 %1324  ;;  %v4211_v63 = vld [vmem:[%s5432_s1 + $0xc8] sm:$0xff]  }
 0x11b   : > { %3656 = vmatprep.subr.msk.bf16.mxu0 %vm681_vm13, %v1164_v13  ;;  %v1323_v53 = vpop.permute.xlu0 %1322  ;;  %v1346_v56 = vsel %vm1326_vm3, %v1325_v52, 0 }
 0x11c   : > { %v1330_v57 = vsel %vm1326_vm3, %v1323_v53, %v1325_v52 }
 0x11d   : > { %v1354_v59 = vsel %vm352_vm6, %v1330_v57, 0 }
 0x11e   : > { %1224 = vmatpush1.bf16.msra.mxu0 %v1174_v14  ;;  %v1489_v60 = vpop.permute.xlu1 %1488 }
 0x11f   : > { %3657 = vmatprep.subr.msk.bf16.mxu0 %vm681_vm13, %v1167_v16  ;;  %v1487_v1 = vpop.permute.xlu0 %1486  ;;  %v4212_v16 = vld [vmem:[%s5432_s1 + $0xd0] sm:$0xff]  }
 0x120   : > { %v1503_v5 = vsel %vm1502_vm4, %v1487_v1, %v1489_v60 }
 0x121   : > { %3640 = vmatmul.mubr.msk.bf16.gmra.mrb[4].mxu0 %vm437_vm8, %v4203_v17 }
 0x122   : > { %1097 = vmatprep.mubr.bf16.mxu0 %v4267_v8  ;;  %1226 = vmatpush1.bf16.msra.mxu0 %v1176_v21  ;;  %v1493_v2 = vpop.permute.xlu1 %1492 }
 0x123   : > { %3658 = vmatprep.subr.msk.bf16.mxu0 %vm681_vm13, %v1170_v23  ;;  %v1491_v0 = vpop.permute.xlu0 %1490  ;;  %v4214_v23 = vld [vmem:[%s5432_s1 + $0xe0] sm:$0xff]  }
 0x124   : > { %v1504_v62 = vsel %vm1502_vm4, %v1491_v0, %v1493_v2 }
 0x126   : > { %1228 = vmatpush1.bf16.msra.mxu0 %v1178_v25  ;;  %v1497_v6 = vpop.permute.xlu1 %1496 }
 0x127   : > { %3675 = vmatprep.subr.msk.bf16.mxu0 %vm353_vm7, %v1337_v26  ;;  %v1495_v7 = vpop.permute.xlu0 %1494 }
 0x128   : > { %v1505_v11 = vsel %vm1502_vm4, %v1495_v7, %v1497_v6 }
 0x129   : > { %3641 = vmatmul.mubr.msk.bf16.gmra.mrb[8].mxu0 %vm437_vm8, %v4204_v27 }
 0x12a   : > { %1107 = vmatprep.mubr.bf16.mxu0 %v4267_v8  ;;  %v1501_v9 = vpop.permute.xlu1 %1500 }
 0x12b   : > { %v1499_v12 = vpop.permute.xlu0 %1498 }
 0x12c   : > { %v1506_v14 = vsel %vm1502_vm4, %v1499_v12, %v1501_v9 }
 0x12e   : > { %v1657_v13 = vpop.permute.xlu1 %1656 }
 0x12f   : > { %v1681_v15 = vsel %vm1670_vm9, %v1657_v13, 0  ;;  %v1655_v17 = vpop.permute.xlu0 %1654 }
 0x130   : > { %v1671_v22 = vsel %vm1670_vm9, %v1655_v17, %v1657_v13 }
 0x131   : > { %3642 = vmatmul.mubr.msk.bf16.gmra.mrb[12].mxu0 %vm437_vm8, %v4205_v29  ;;  %v1692_v24 = vsel %vm680_vm14, %v1671_v22, 0 }
 0x132   : > { %1253 = vmatprep.mubr.bf16.mxu0 %v4267_v8  ;;  %v1661_v20 = vpop.permute.xlu1 %1660 }
 0x133   : > { %v1659_v21 = vpop.permute.xlu0 %1658  ;;  %v1684_v27 = vsel %vm1670_vm9, %v1661_v20, 0 }
 0x134   : > { %v1672_v28 = vsel %vm1670_vm9, %v1659_v21, %v1661_v20 }
 0x135   : > { %v1694_v29 = vsel %vm680_vm14, %v1672_v28, 0 }
 0x136   : > { %v1665_v25 = vpop.permute.xlu1 %1664 }
 0x137   : > { %v1663_v26 = vpop.permute.xlu0 %1662  ;;  %v1687_v30 = vsel %vm1670_vm9, %v1665_v25, 0 }
 0x138   : > { %v1673_v31 = vsel %vm1670_vm9, %v1663_v26, %v1665_v25 }
 0x139   : > { %3659 = vmatmul.mubr.msk.bf16.vlgmr.msra.gmra.mrb[0].mxu0 %vm437_vm8, %v4206_v39  ;;  %v1696_v37 = vsel %vm680_vm14, %v1673_v31, 0 }
 0x13a   : > { %1398 = vmatpush1.bf16.msra.mxu0 %v1348_v40  ;;  %1263 = vmatprep.mubr.bf16.mxu0 %v4267_v8  ;;  %v1669_v35 = vpop.permute.xlu1 %1668 }
 0x13b   : > { %3676 = vmatprep.subr.msk.bf16.mxu0 %vm353_vm7, %v1340_v44  ;;  %v1667_v36 = vpop.permute.xlu0 %1666  ;;  %v1690_v38 = vsel %vm1670_vm9, %v1669_v35, 0  ;;  %v4219_v44 = vld [vmem:[%s5432_s1 + $0x108] sm:$0xff]  }
 0x13c   : > { %v1674_v39 = vsel %vm1670_vm9, %v1667_v36, %v1669_v35 }
 0x13d   : > { %v1698_v40 = vsel %vm680_vm14, %v1674_v39, 0 }
 0x13e   : > { %1400 = vmatpush1.bf16.msra.mxu0 %v1350_v47 }
 0x13f   : > { %3677 = vmatprep.subr.msk.bf16.mxu0 %vm353_vm7, %v1343_v49 }
 0x141   : > { %3660 = vmatmul.mubr.msk.bf16.gmra.mrb[4].mxu0 %vm437_vm8, %v4207_v51 }
 0x142   : > { %1273 = vmatprep.mubr.bf16.mxu0 %v4267_v8  ;;  %1402 = vmatpush1.bf16.msra.mxu0 %v1352_v55 }
 0x143   : > { %3678 = vmatprep.subr.msk.bf16.mxu0 %vm353_vm7, %v1346_v56 }
 0x146   : > { %1404 = vmatpush1.bf16.msra.mxu0 %v1354_v59  ;;  %v1841_v47 = vpop.permute.xlu0 %1840 }
 0x147   : > { %3695 = vmatprep.subr.msk.bf16.mxu0 %vm1502_vm4, %v1489_v60  ;;  %v1846_v49 = vpop.permute.xlu1 %1845 }
 0x149   : > { %3661 = vmatmul.mubr.msk.bf16.gmra.mrb[8].mxu0 %vm437_vm8, %v4208_v3 }
 0x14a   : > { %1283 = vmatprep.mubr.bf16.mxu0 %v4267_v8 }
 0x151   : > { %3662 = vmatmul.mubr.msk.bf16.gmra.mrb[12].mxu0 %vm437_vm8, %v4209_v61  ;;  %v1851_v61 = vpop.permute.xlu1 %1850 }
 0x152   : > { %1429 = vmatprep.mubr.bf16.mxu0 %v4267_v8 }
 0x155   : > { %v1861_v17 = vpop.permute.xlu1 %1860 }
 0x159   : > { %3679 = vmatmul.mubr.msk.bf16.vlgmr.msra.gmra.mrb[0].mxu0 %vm437_vm8, %v4210_v4 }
 0x15a   : > { %1566 = vmatpush1.bf16.msra.mxu0 %v1503_v5  ;;  %1439 = vmatprep.mubr.bf16.mxu0 %v4267_v8 }
 0x15b   : > { %3696 = vmatprep.subr.msk.bf16.mxu0 %vm1502_vm4, %v1493_v2 }
 0x15e   : > { %1568 = vmatpush1.bf16.msra.mxu0 %v1504_v62 }
 0x15f   : > { %3697 = vmatprep.subr.msk.bf16.mxu0 %vm1502_vm4, %v1497_v6  ;;  %v1856_v6 = vpop.permute.xlu0 %1855 }
 0x161   : > { %3680 = vmatmul.mubr.msk.bf16.gmra.mrb[4].mxu0 %vm437_vm8, %v4211_v63 }
 0x162   : > { %1449 = vmatprep.mubr.bf16.mxu0 %v4267_v8  ;;  %1570 = vmatpush1.bf16.msra.mxu0 %v1505_v11  ;;  %v1871_v36 = vpop.permute.xlu1 %1870 }
 0x163   : > { %3698 = vmatprep.subr.msk.bf16.mxu0 %vm1502_vm4, %v1501_v9 }
 0x166   : > { %1572 = vmatpush1.bf16.msra.mxu0 %v1506_v14 }
 0x167   : > { %3715 = vmatprep.subr.msk.bf16.mxu0 %vm681_vm13, %v1681_v15 }
 0x169   : > { %3681 = vmatmul.mubr.msk.bf16.gmra.mrb[8].mxu0 %vm437_vm8, %v4212_v16 }
 0x16a   : > { %1459 = vmatprep.mubr.bf16.mxu0 %v4267_v8 }
 0x171   : > { %3682 = vmatmul.mubr.msk.bf16.gmra.mrb[12].mxu0 %vm437_vm8, %v4213_v19 }
 0x172   : > { %1597 = vmatprep.mubr.bf16.mxu0 %v4267_v8 }
 0x179   : > { %3699 = vmatmul.mubr.msk.bf16.vlgmr.msra.gmra.mrb[0].mxu0 %vm437_vm8, %v4214_v23  ;;  %v1866_v23 = vpop.permute.xlu0 %1865 }
 0x17a   : > { %1742 = vmatpush1.bf16.msra.mxu0 %v1692_v24  ;;  %1607 = vmatprep.mubr.bf16.mxu0 %v4267_v8 }
 0x17b   : > { %3716 = vmatprep.subr.msk.bf16.mxu0 %vm681_vm13, %v1684_v27 }
 0x17e   : > { %1744 = vmatpush1.bf16.msra.mxu0 %v1694_v29 }
 0x17f   : > { %3717 = vmatprep.subr.msk.bf16.mxu0 %vm681_vm13, %v1687_v30 }
 0x181   : > { %3700 = vmatmul.mubr.msk.bf16.gmra.mrb[4].mxu0 %vm437_vm8, %v4215_v32 }
 0x182   : > { %1617 = vmatprep.mubr.bf16.mxu0 %v4267_v8  ;;  %1746 = vmatpush1.bf16.msra.mxu0 %v1696_v37 }
 0x183   : > { %3718 = vmatprep.subr.msk.bf16.mxu0 %vm681_vm13, %v1690_v38 }
 0x186   : > { %1748 = vmatpush1.bf16.msra.mxu0 %v1698_v40 }
 0x189   : > { %3701 = vmatmul.mubr.msk.bf16.gmra.mrb[8].mxu0 %vm437_vm8, %v4216_v41  ;;  %v1876_v41 = vpop.permute.xlu0 %1875 }
 0x18a   : > { %1627 = vmatprep.mubr.bf16.mxu0 %v4267_v8 }
 0x191   : > { %3702 = vmatmul.mubr.msk.bf16.gmra.mrb[12].mxu0 %vm437_vm8, %v4217_v42 }
 0x192   : > { %1773 = vmatprep.mubr.bf16.mxu0 %v4267_v8 }
 0x199   : > { %3719 = vmatmul.mubr.msk.bf16.vlgmr.msra.gmra.mrb[0].mxu0 %vm437_vm8, %v4218_v43 }
 0x19a   : > { %1783 = vmatprep.mubr.bf16.mxu0 %v4267_v8 }
 0x1a1   : > { %3720 = vmatmul.mubr.msk.bf16.gmra.mrb[4].mxu0 %vm437_vm8, %v4219_v44 }
 0x1a2   : > { %1793 = vmatprep.mubr.bf16.mxu0 %v4267_v8 }
 0x1a9   : > { %3721 = vmatmul.mubr.msk.bf16.gmra.mrb[8].mxu0 %vm437_vm8, %v4220_v45 }
 0x1aa   : > { %1803 = vmatprep.mubr.bf16.mxu0 %v4267_v8 }
 0x1b1   : > { %3722 = vmatmul.mubr.msk.bf16.gmra.mrb[12].mxu0 %vm437_vm8, %v4221_v46 }
 0x26c   : > { %v1775_v48 = vpop.f32.mrb[0].mxu0 }
 0x26d   : > { %v1878_v50 = vadd.f32 %v1841_v47, %v1775_v48  ;;  %v1777_v51 = vpop.f32.mrb[1].mxu0 }
 0x26e   : > { %v1879_v52 = vadd.f32 %v1841_v47, %v1777_v51  ;;  %v1779_v53 = vpop.f32.mrb[2].mxu0 }
 0x26f   : > { %v1880_v54 = vadd.f32 %v1846_v49, %v1779_v53  ;;  %v1781_v55 = vpop.f32.mrb[3].mxu0  ;;  %v1894_v57 = vmax.f32 %v1878_v50, 0.0 }
 0x270   : > { %v1881_v56 = vadd.f32 %v1846_v49, %v1781_v55  ;;  %v1895_v60 = vmax.f32 %v1879_v52, 0.0 }
 0x271   : > { %v1896_v59 = vmax.f32 %v1880_v54, 0.0 }
 0x272   : > { %v1897_v3 = vmax.f32 %v1881_v56, 0.0 }
 0x273   : > { %v4887_v1 = vpack.c.bf16 %v1896_v59, %v1894_v57 }
 0x274   : > { %v4889_v2 = vpack.c.bf16 %v1897_v3, %v1895_v60  ;;  %v1785_v0 = vpop.f32.mrb[4].mxu0 }
 0x275   : > { %v1882_v4 = vadd.f32 %v1851_v61, %v1785_v0  ;;  %v1787_v5 = vpop.f32.mrb[5].mxu0  ;;  %1978 = vrot.lane.b32.xlu1 %v4887_v1, %s4266_s24  ;;  %v3399_v0 = vld [vmem:[%s5435_s4] sm:$0xff] }
 0x276   : > { %v1883_v7 = vadd.f32 %v1851_v61, %v1787_v5  ;;  %v1789_v62 = vpop.f32.mrb[6].mxu0  ;;  %1980 = vrot.lane.b32.xlu0 %v4889_v2, %s4266_s24  ;;  %v3400_v5 = vld [vmem:[%s5435_s4 + $0x8] sm:$0xff] }
 0x277   : > { %v1884_v63 = vadd.f32 %v1856_v6, %v1789_v62  ;;  %v1791_v9 = vpop.f32.mrb[7].mxu0  ;;  %v1898_v12 = vmax.f32 %v1882_v4, 0.0  ;;  %v3401_v62 = vld [vmem:[%s5435_s4 + $0x10] sm:$0xff] }
 0x278   : > { %v1885_v11 = vadd.f32 %v1856_v6, %v1791_v9  ;;  %v1899_v14 = vmax.f32 %v1883_v7, 0.0 }
 0x279   : > { %v1900_v13 = vmax.f32 %v1884_v63, 0.0  ;;  %v4222_v63 = vld [vmem:[%s5434_s3 + $0x20] sm:$0xff]  }
 0x27a   : > { %v1901_v15 = vmax.f32 %v1885_v11, 0.0  ;;  %v3402_v11 = vld [vmem:[%s5435_s4 + $0x18] sm:$0xff] }
 0x27b   : > { %v4895_v16 = vpack.c.bf16 %v1900_v13, %v1898_v12 }
 0x27c   : > { %v4897_v19 = vpack.c.bf16 %v1901_v15, %v1899_v14  ;;  %v1795_v20 = vpop.f32.mrb[8].mxu0 }
 0x27d   : > { %v1886_v21 = vadd.f32 %v1861_v17, %v1795_v20  ;;  %v1797_v22 = vpop.f32.mrb[9].mxu0  ;;  %1982 = vrot.lane.b32.xlu1 %v4895_v16, %s4266_s24  ;;  %v3404_v20 = vld [vmem:[%s5435_s4 + $0x28] sm:$0xff] }
 0x27e   : > { %v1887_v24 = vadd.f32 %v1861_v17, %v1797_v22  ;;  %v1799_v25 = vpop.f32.mrb[10].mxu0  ;;  %1984 = vrot.lane.b32.xlu0 %v4897_v19, %s4266_s24 }
 0x27f   : > { %v1888_v26 = vadd.f32 %v1866_v23, %v1799_v25  ;;  %v1801_v27 = vpop.f32.mrb[11].mxu0  ;;  %v1902_v29 = vmax.f32 %v1886_v21, 0.0  ;;  %v3405_v25 = vld [vmem:[%s5435_s4 + $0x30] sm:$0xff] }
 0x280   : > { %v1889_v28 = vadd.f32 %v1866_v23, %v1801_v27  ;;  %v1903_v31 = vmax.f32 %v1887_v24, 0.0 }
 0x281   : > { %v1904_v30 = vmax.f32 %v1888_v26, 0.0  ;;  %v4223_v26 = vld [vmem:[%s5434_s3 + $0x28] sm:$0xff]  }
 0x282   : > { %v1905_v32 = vmax.f32 %v1889_v28, 0.0  ;;  %v3406_v28 = vld [vmem:[%s5435_s4 + $0x38] sm:$0xff] }
 0x283   : > { %v4903_v35 = vpack.c.bf16 %v1904_v30, %v1902_v29 }
 0x284   : > { %v4905_v37 = vpack.c.bf16 %v1905_v32, %v1903_v31  ;;  %v1805_v38 = vpop.f32.mrb[12].mxu0 }
 0x285   : > { %v1890_v39 = vadd.f32 %v1871_v36, %v1805_v38  ;;  %v1807_v40 = vpop.f32.mrb[13].mxu0  ;;  %1986 = vrot.lane.b32.xlu1 %v4903_v35, %s4266_s24 }
 0x286   : > { %v1891_v42 = vadd.f32 %v1871_v36, %v1807_v40  ;;  %v1809_v43 = vpop.f32.mrb[14].mxu0  ;;  %1988 = vrot.lane.b32.xlu0 %v4905_v37, %s4266_s24 }
 0x287   : > { %v1892_v44 = vadd.f32 %v1876_v41, %v1809_v43  ;;  %v1811_v45 = vpop.f32.mrb[15].mxu0  ;;  %v1906_v47 = vmax.f32 %v1890_v39, 0.0 }
 0x288   : > { %v1893_v46 = vadd.f32 %v1876_v41, %v1811_v45  ;;  %v1907_v49 = vmax.f32 %v1891_v42, 0.0  ;;  %v4224_v42 = vld [vmem:[%s5434_s3 + $0x30] sm:$0xff]  }
 0x289   : > { %v1908_v48 = vmax.f32 %v1892_v44, 0.0 }
 0x28a   : > { %v1909_v50 = vmax.f32 %v1893_v46, 0.0  ;;  %v4225_v46 = vld [vmem:[%s5434_s3 + $0x38] sm:$0xff]  }
 0x28b   : > { %v4911_v51 = vpack.c.bf16 %v1908_v48, %v1906_v47 }
 0x28c   : > { %v4913_v52 = vpack.c.bf16 %v1909_v50, %v1907_v49  ;;  %v4226_v49 = vld [vmem:[%s5434_s3] sm:$0xff]  }
 0x28d   : > { %1990 = vrot.lane.b32.xlu1 %v4911_v51, %s4266_s24 }
 0x28e   : > { %1992 = vrot.lane.b32.xlu0 %v4913_v52, %s4266_s24 }
 0x291   : > { %1926 = vrot.lane.b32.xlu1 %v4887_v1, %s4268_s25 }
 0x292   : > { %1928 = vrot.lane.b32.xlu0 %v4889_v2, %s4268_s25 }
 0x295   : > { %1930 = vrot.lane.b32.xlu1 %v4895_v16, %s4268_s25 }
 0x296   : > { %1932 = vrot.lane.b32.xlu0 %v4897_v19, %s4268_s25 }
 0x299   : > { %1934 = vrot.lane.b32.xlu1 %v4903_v35, %s4268_s25 }
 0x29a   : > { %1936 = vrot.lane.b32.xlu0 %v4905_v37, %s4268_s25 }
 0x29d   : > { %1938 = vrot.lane.b32.xlu1 %v4911_v51, %s4268_s25 }
 0x29e   : > { %1940 = vrot.lane.b32.xlu0 %v4913_v52, %s4268_s25 }
 0x2a1   : > { %2233 = vrot.lane.b32.xlu1 %v4887_v1, %s4269_s26 }
 0x2a2   : > { %2235 = vrot.lane.b32.xlu0 %v4889_v2, %s4269_s26 }
 0x2a5   : > { %2237 = vrot.lane.b32.xlu1 %v4895_v16, %s4269_s26 }
 0x2a6   : > { %2239 = vrot.lane.b32.xlu0 %v4897_v19, %s4269_s26 }
 0x2a9   : > { %2241 = vrot.lane.b32.xlu1 %v4903_v35, %s4269_s26 }
 0x2aa   : > { %2243 = vrot.lane.b32.xlu0 %v4905_v37, %s4269_s26 }
 0x2ad   : > { %2245 = vrot.lane.b32.xlu1 %v4911_v51, %s4269_s26 }
 0x2ae   : > { %2247 = vrot.lane.b32.xlu0 %v4913_v52, %s4269_s26 }
 0x2b1   : > { %2407 = vrot.lane.b32.xlu1 %v4887_v1, %s4270_s27 }
 0x2b2   : > { %2409 = vrot.lane.b32.xlu0 %v4889_v2, %s4270_s27 }
 0x2b5   : > { %2411 = vrot.lane.b32.xlu1 %v4895_v16, %s4270_s27 }
 0x2b6   : > { %2413 = vrot.lane.b32.xlu0 %v4897_v19, %s4270_s27 }
 0x2b9   : > { %2415 = vrot.lane.b32.xlu1 %v4903_v35, %s4270_s27 }
 0x2ba   : > { %2417 = vrot.lane.b32.xlu0 %v4905_v37, %s4270_s27 }
 0x2bd   : > { %2419 = vrot.lane.b32.xlu1 %v4911_v51, %s4270_s27 }
 0x2be   : > { %2421 = vrot.lane.b32.xlu0 %v4913_v52, %s4270_s27 }
 0x2c1   : > { %2711 = vrot.lane.b32.xlu1 %v4887_v1, %s4271_s28 }
 0x2c2   : > { %2713 = vrot.lane.b32.xlu0 %v4889_v2, %s4271_s28 }
 0x2c5   : > { %2715 = vrot.lane.b32.xlu1 %v4895_v16, %s4271_s28 }
 0x2c6   : > { %2717 = vrot.lane.b32.xlu0 %v4897_v19, %s4271_s28 }
 0x2c9   : > { %2719 = vrot.lane.b32.xlu1 %v4903_v35, %s4271_s28 }
 0x2ca   : > { %2721 = vrot.lane.b32.xlu0 %v4905_v37, %s4271_s28 }
 0x2cd   : > { %2723 = vrot.lane.b32.xlu1 %v4911_v51, %s4271_s28 }
 0x2ce   : > { %2725 = vrot.lane.b32.xlu0 %v4913_v52, %s4271_s28 }
 0x2d1   : > { %2885 = vrot.lane.b32.xlu1 %v4887_v1, %s4272_s29 }
 0x2d2   : > { %2887 = vrot.lane.b32.xlu0 %v4889_v2, %s4272_s29 }
 0x2d5   : > { %2889 = vrot.lane.b32.xlu1 %v4895_v16, %s4272_s29 }
 0x2d6   : > { %2891 = vrot.lane.b32.xlu0 %v4897_v19, %s4272_s29 }
 0x2d9   : > { %2893 = vrot.lane.b32.xlu1 %v4903_v35, %s4272_s29 }
 0x2da   : > { %2895 = vrot.lane.b32.xlu0 %v4905_v37, %s4272_s29 }
 0x2dd   : > { %2897 = vrot.lane.b32.xlu1 %v4911_v51, %s4272_s29 }
 0x2de   : > { %2899 = vrot.lane.b32.xlu0 %v4913_v52, %s4272_s29 }
 0x2e1   : > { %3059 = vrot.lane.b32.xlu1 %v4887_v1, %s4273_s30 }
 0x2e2   : > { %3061 = vrot.lane.b32.xlu0 %v4889_v2, %s4273_s30 }
 0x2e5   : > { %3063 = vrot.lane.b32.xlu1 %v4895_v16, %s4273_s30 }
 0x2e6   : > { %3065 = vrot.lane.b32.xlu0 %v4897_v19, %s4273_s30 }
 0x2e7   : > { %v1979_v53 = vpop.permute.xlu1 %1978 }
 0x2e8   : > { %v1981_v54 = vpop.permute.xlu0 %1980 }
 0x2e9   : > { %3067 = vrot.lane.b32.xlu1 %v4903_v35, %s4273_s30  ;;  %v1994_v55 = vsel %vm386_vm0, %v1979_v53, %v1981_v54 }
 0x2ea   : > { %3069 = vrot.lane.b32.xlu0 %v4905_v37, %s4273_s30  ;;  %2055 = vmatprep.subr.bf16.mxu1 %v1994_v55 }
 0x2eb   : > { %3736 = vmatpush1.bf16.msk.msra.mxu1 %vm4460_vm1, %v1979_v53 }
 0x2ed   : > { %3071 = vrot.lane.b32.xlu1 %v4911_v51, %s4273_s30 }
 0x2ee   : > { %3073 = vrot.lane.b32.xlu0 %v4913_v52, %s4273_s30 }
 0x2ef   : > { %v1983_v56 = vpop.permute.xlu1 %1982 }
 0x2f0   : > { %v1985_v57 = vpop.permute.xlu0 %1984 }
 0x2f1   : > { %3225 = vrot.lane.b32.xlu1 %v4887_v1, %s4274_s6  ;;  %v1995_v59 = vsel %vm386_vm0, %v1983_v56, %v1985_v57 }
 0x2f2   : > { %3227 = vrot.lane.b32.xlu0 %v4889_v2, %s4274_s6  ;;  %2057 = vmatprep.subr.bf16.mxu1 %v1995_v59 }
 0x2f3   : > { %3738 = vmatpush1.bf16.msk.msra.mxu1 %vm4460_vm1, %v1983_v56 }
 0x2f5   : > { %3229 = vrot.lane.b32.xlu1 %v4895_v16, %s4274_s6 }
 0x2f6   : > { %3231 = vrot.lane.b32.xlu0 %v4897_v19, %s4274_s6 }
 0x2f7   : > { %v1987_v60 = vpop.permute.xlu1 %1986 }
 0x2f8   : > { %v1989_v3 = vpop.permute.xlu0 %1988 }
 0x2f9   : > { %3233 = vrot.lane.b32.xlu1 %v4903_v35, %s4274_s6  ;;  %v1996_v61 = vsel %vm386_vm0, %v1987_v60, %v1989_v3 }
 0x2fa   : > { %3235 = vrot.lane.b32.xlu0 %v4905_v37, %s4274_s6  ;;  %2059 = vmatprep.subr.bf16.mxu1 %v1996_v61  ;;  %v4227_v61 = vld [vmem:[%s5434_s3 + $0x8] sm:$0xff]  }
 0x2fb   : > { %3740 = vmatpush1.bf16.msk.msra.mxu1 %vm4460_vm1, %v1987_v60 }
 0x2fd   : > { %3237 = vrot.lane.b32.xlu1 %v4911_v51, %s4274_s6 }
 0x2fe   : > { %3239 = vrot.lane.b32.xlu0 %v4913_v52, %s4274_s6 }
 0x2ff   : > { %v1991_v4 = vpop.permute.xlu1 %1990 }
 0x300   : > { %v1993_v6 = vpop.permute.xlu0 %1992 }
 0x301   : > { %3409 = vperm.xlu1 %4173, %v3399_v0   ;;  %v1997_v7 = vsel %vm386_vm0, %v1991_v4, %v1993_v6 }
 0x302   : > { %3414 = vperm.xlu0 %4172, %v3400_v5   ;;  %2061 = vmatprep.subr.bf16.mxu1 %v1997_v7 }
 0x303   : > { %v1927_v9 = vpop.permute.xlu1 %1926  ;;  %3742 = vmatpush1.bf16.msk.msra.mxu1 %vm4460_vm1, %v1991_v4 }
 0x304   : > { %v1951_v12 = vsel %vm315_vm5, 0, %v1927_v9  ;;  %v1929_v13 = vpop.permute.xlu0 %1928 }
 0x305   : > { %v1962_v14 = vsel %vm352_vm6, %v1951_v12, 0  ;;  %v1942_v15 = vsel %vm315_vm5, %v1927_v9, %v1929_v13  ;;  %3419 = vperm.xlu1 %4173, %v3401_v62   ;;  %v4229_v13 = vld [vmem:[%s5434_s3 + $0x18] sm:$0xff]  }
 0x306   : > { %3424 = vperm.xlu0 %4172, %v3402_v11   ;;  %3743 = vmatmul.mubr.msk.bf16.vlgmr.msra.gmra.mrb[0].mxu1 %vm437_vm8, %v4222_v63  ;;  %v4228_v11 = vld [vmem:[%s5434_s3 + $0x10] sm:$0xff]  }
 0x307   : > { %3751 = vmatprep.subr.msk.bf16.mxu1 %vm353_vm7, %v1942_v15  ;;  %v1931_v17 = vpop.permute.xlu1 %1930  ;;  %2097 = vmatprep.mubr.bf16.mxu1 %v4267_v8 }
 0x308   : > { %v1954_v21 = vsel %vm315_vm5, 0, %v1931_v17  ;;  %2161 = vmatpush1.bf16.msra.mxu1 %v1962_v14  ;;  %v1933_v22 = vpop.permute.xlu0 %1932 }
 0x309   : > { %v1964_v23 = vsel %vm352_vm6, %v1954_v21, 0  ;;  %v1943_v24 = vsel %vm315_vm5, %v1931_v17, %v1933_v22  ;;  %3429 = vperm.xlu1 %4173, %v3403_v18   ;;  %v4230_v18 = vld [vmem:[%s5434_s3 + $0x40] sm:$0xff]  }
 0x30a   : > { %3434 = vperm.xlu0 %4172, %v3404_v20   ;;  %3752 = vmatprep.subr.msk.bf16.mxu1 %vm353_vm7, %v1943_v24 }
 0x30b   : > { %v1935_v27 = vpop.permute.xlu1 %1934 }
 0x30c   : > { %v1957_v29 = vsel %vm315_vm5, 0, %v1935_v27  ;;  %2163 = vmatpush1.bf16.msra.mxu1 %v1964_v23  ;;  %v1937_v30 = vpop.permute.xlu0 %1936 }
 0x30d   : > { %v1966_v31 = vsel %vm352_vm6, %v1957_v29, 0  ;;  %v1944_v32 = vsel %vm315_vm5, %v1935_v27, %v1937_v30  ;;  %3439 = vperm.xlu1 %4173, %v3405_v25  }
 0x30e   : > { %3444 = vperm.xlu0 %4172, %v3406_v28   ;;  %3744 = vmatmul.mubr.msk.bf16.gmra.mrb[4].mxu1 %vm437_vm8, %v4223_v26  ;;  %v4231_v26 = vld [vmem:[%s5434_s3 + $0x48] sm:$0xff]  }
 0x30f   : > { %3753 = vmatprep.subr.msk.bf16.mxu1 %vm353_vm7, %v1944_v32  ;;  %v1939_v36 = vpop.permute.xlu1 %1938  ;;  %2107 = vmatprep.mubr.bf16.mxu1 %v4267_v8 }
 0x310   : > { %v1960_v38 = vsel %vm315_vm5, 0, %v1939_v36  ;;  %2165 = vmatpush1.bf16.msra.mxu1 %v1966_v31  ;;  %v1941_v39 = vpop.permute.xlu0 %1940 }
 0x311   : > { %v1968_v40 = vsel %vm352_vm6, %v1960_v38, 0  ;;  %v1945_v41 = vsel %vm315_vm5, %v1939_v36, %v1941_v39  ;;  %v4232_v39 = vld [vmem:[%s5434_s3 + $0x50] sm:$0xff]  }
 0x312   : > { %3754 = vmatprep.subr.msk.bf16.mxu1 %vm353_vm7, %v1945_v41  ;;  %v4234_v41 = vld [vmem:[%s5434_s3 + $0x60] sm:$0xff]  }
 0x313   : > { %v2234_v43 = vpop.permute.xlu1 %2233 }
 0x314   : > { %2167 = vmatpush1.bf16.msra.mxu1 %v1968_v40  ;;  %v2236_v44 = vpop.permute.xlu0 %2235  ;;  %v2258_v50 = vsel %vm644_vm12, 0, %v2234_v43  ;;  %v4233_v40 = vld [vmem:[%s5434_s3 + $0x58] sm:$0xff]  }
 0x315   : > { %v2249_v45 = vsel %vm644_vm12, %v2234_v43, %v2236_v44  ;;  %v2269_v55 = vsel %vm680_vm14, %v2258_v50, 0 }
 0x316   : > { %3745 = vmatmul.mubr.msk.bf16.gmra.mrb[8].mxu1 %vm437_vm8, %v4224_v42  ;;  %3771 = vmatprep.subr.msk.bf16.mxu1 %vm681_vm13, %v2249_v45 }
 0x317   : > { %2117 = vmatprep.mubr.bf16.mxu1 %v4267_v8  ;;  %v2238_v47 = vpop.permute.xlu1 %2237 }
 0x318   : > { %v2240_v48 = vpop.permute.xlu0 %2239  ;;  %v2261_v56 = vsel %vm644_vm12, 0, %v2238_v47 }
 0x319   : > { %v2250_v57 = vsel %vm644_vm12, %v2238_v47, %v2240_v48  ;;  %v2271_v59 = vsel %vm680_vm14, %v2261_v56, 0 }
 0x31b   : > { %v2242_v53 = vpop.permute.xlu1 %2241 }
 0x31c   : > { %v2244_v54 = vpop.permute.xlu0 %2243  ;;  %v2264_v0 = vsel %vm644_vm12, 0, %v2242_v53 }
 0x31d   : > { %v2251_v4 = vsel %vm644_vm12, %v2242_v53, %v2244_v54  ;;  %v2273_v5 = vsel %vm680_vm14, %v2264_v0, 0  ;;  %v4239_v53 = vld [vmem:[%s5434_s3 + $0x88] sm:$0xff]   ;;  %v4240_v0 = vld [vmem:[%s5434_s3 + $0x90] sm:$0xff]  }
 0x31e   : > { %3746 = vmatmul.mubr.msk.bf16.gmra.mrb[12].mxu1 %vm437_vm8, %v4225_v46 }
 0x31f   : > { %2192 = vmatprep.mubr.bf16.mxu1 %v4267_v8  ;;  %v2246_v60 = vpop.permute.xlu1 %2245 }
 0x320   : > { %v2248_v3 = vpop.permute.xlu0 %2247  ;;  %v2267_v6 = vsel %vm644_vm12, 0, %v2246_v60 }
 0x321   : > { %v2252_v7 = vsel %vm644_vm12, %v2246_v60, %v2248_v3  ;;  %v2275_v9 = vsel %vm680_vm14, %v2267_v6, 0  ;;  %v4241_v6 = vld [vmem:[%s5434_s3 + $0x98] sm:$0xff]  }
 0x323   : > { %v2408_v62 = vpop.permute.xlu1 %2407 }
 0x324   : > { %v2410_v63 = vpop.permute.xlu0 %2409  ;;  %v2432_v17 = vsel %vm836_vm15, 0, %v2408_v62 }
 0x325   : > { %v2423_v12 = vsel %vm836_vm15, %v2408_v62, %v2410_v63  ;;  %v2443_v20 = vsel %vm352_vm6, %v2432_v17, 0  ;;  %v4242_v63 = vld [vmem:[%s5434_s3 + $0xa0] sm:$0xff]   ;;  %v4243_v17 = vld [vmem:[%s5434_s3 + $0xa8] sm:$0xff]  }
 0x326   : > { %3755 = vmatmul.mubr.msk.bf16.vlgmr.msra.gmra.mrb[0].mxu1 %vm437_vm8, %v4226_v49 }
 0x327   : > { %2319 = vmatpush1.bf16.msra.mxu1 %v2269_v55  ;;  %2202 = vmatprep.mubr.bf16.mxu1 %v4267_v8  ;;  %v2412_v14 = vpop.permute.xlu1 %2411 }
 0x328   : > { %3772 = vmatprep.subr.msk.bf16.mxu1 %vm681_vm13, %v2250_v57  ;;  %v2414_v15 = vpop.permute.xlu0 %2413  ;;  %v2435_v23 = vsel %vm836_vm15, 0, %v2412_v14 }
 0x329   : > { %v2424_v24 = vsel %vm836_vm15, %v2412_v14, %v2414_v15  ;;  %v2445_v25 = vsel %vm352_vm6, %v2435_v23, 0 }
 0x32b   : > { %2321 = vmatpush1.bf16.msra.mxu1 %v2271_v59  ;;  %v2416_v21 = vpop.permute.xlu1 %2415 }
 0x32c   : > { %3773 = vmatprep.subr.msk.bf16.mxu1 %vm681_vm13, %v2251_v4  ;;  %v2418_v22 = vpop.permute.xlu0 %2417  ;;  %v2438_v27 = vsel %vm836_vm15, 0, %v2416_v21 }
 0x32d   : > { %v2425_v28 = vsel %vm836_vm15, %v2416_v21, %v2418_v22  ;;  %v2447_v31 = vsel %vm352_vm6, %v2438_v27, 0 }
 0x32e   : > { %3756 = vmatmul.mubr.msk.bf16.gmra.mrb[4].mxu1 %vm437_vm8, %v4227_v61 }
 0x32f   : > { %2323 = vmatpush1.bf16.msra.mxu1 %v2273_v5  ;;  %2212 = vmatprep.mubr.bf16.mxu1 %v4267_v8  ;;  %v2420_v29 = vpop.permute.xlu1 %2419 }
 0x330   : > { %3774 = vmatprep.subr.msk.bf16.mxu1 %vm681_vm13, %v2252_v7  ;;  %v2422_v30 = vpop.permute.xlu0 %2421  ;;  %v2441_v32 = vsel %vm836_vm15, 0, %v2420_v29 }
 0x331   : > { %v2426_v36 = vsel %vm836_vm15, %v2420_v29, %v2422_v30  ;;  %v2449_v38 = vsel %vm352_vm6, %v2441_v32, 0 }
 0x333   : > { %2325 = vmatpush1.bf16.msra.mxu1 %v2275_v9 }
 0x334   : > { %3791 = vmatprep.subr.msk.bf16.mxu1 %vm353_vm7, %v2423_v12  ;;  %v2714_v42 = vpop.permute.xlu0 %2713 }
 0x336   : > { %3757 = vmatmul.mubr.msk.bf16.gmra.mrb[8].mxu1 %vm437_vm8, %v4228_v11 }
 0x337   : > { %2222 = vmatprep.mubr.bf16.mxu1 %v4267_v8 }
 0x33e   : > { %3758 = vmatmul.mubr.msk.bf16.gmra.mrb[12].mxu1 %vm437_vm8, %v4229_v13 }
 0x33f   : > { %2350 = vmatprep.mubr.bf16.mxu1 %v4267_v8 }
 0x346   : > { %3775 = vmatmul.mubr.msk.bf16.vlgmr.msra.gmra.mrb[0].mxu1 %vm437_vm8, %v4230_v18 }
 0x347   : > { %2493 = vmatpush1.bf16.msra.mxu1 %v2443_v20  ;;  %2360 = vmatprep.mubr.bf16.mxu1 %v4267_v8 }
 0x348   : > { %3792 = vmatprep.subr.msk.bf16.mxu1 %vm353_vm7, %v2424_v24 }
 0x34b   : > { %2495 = vmatpush1.bf16.msra.mxu1 %v2445_v25 }
 0x34c   : > { %3793 = vmatprep.subr.msk.bf16.mxu1 %vm353_vm7, %v2425_v28  ;;  %v4244_v28 = vld [vmem:[%s5434_s3 + $0xb0] sm:$0xff]  }
 0x34e   : > { %3776 = vmatmul.mubr.msk.bf16.gmra.mrb[4].mxu1 %vm437_vm8, %v4231_v26 }
 0x34f   : > { %2497 = vmatpush1.bf16.msra.mxu1 %v2447_v31  ;;  %2370 = vmatprep.mubr.bf16.mxu1 %v4267_v8 }
 0x350   : > { %3794 = vmatprep.subr.msk.bf16.mxu1 %vm353_vm7, %v2426_v36 }
 0x353   : > { %2499 = vmatpush1.bf16.msra.mxu1 %v2449_v38 }
 0x354   : > { %2622 = vmatprep.subr.bf16.mxu1 %v4889_v2  ;;  %v4235_v2 = vld [vmem:[%s5434_s3 + $0x68] sm:$0xff]  }
 0x356   : > { %3777 = vmatmul.mubr.msk.bf16.gmra.mrb[8].mxu1 %vm437_vm8, %v4232_v39 }
 0x357   : > { %2380 = vmatprep.mubr.bf16.mxu1 %v4267_v8 }
 0x35e   : > { %3778 = vmatmul.mubr.msk.bf16.gmra.mrb[12].mxu1 %vm437_vm8, %v4233_v40 }
 0x35f   : > { %2524 = vmatprep.mubr.bf16.mxu1 %v4267_v8 }
 0x366   : > { %3795 = vmatmul.mubr.msk.bf16.vlgmr.msra.gmra.mrb[0].mxu1 %vm437_vm8, %v4234_v41 }
 0x367   : > { %2623 = vmatpush1.bf16.msra.mxu1 %v4887_v1  ;;  %2534 = vmatprep.mubr.bf16.mxu1 %v4267_v8  ;;  %v4236_v1 = vld [vmem:[%s5434_s3 + $0x70] sm:$0xff]  }
 0x368   : > { %2624 = vmatprep.subr.bf16.mxu1 %v4897_v19  ;;  %v2736_v19 = vsel %vm1150_vm2, %v2714_v42, 0 }
 0x36b   : > { %2625 = vmatpush1.bf16.msra.mxu1 %v4895_v16  ;;  %v2712_v16 = vpop.permute.xlu1 %2711 }
 0x36c   : > { %2626 = vmatprep.subr.bf16.mxu1 %v4905_v37  ;;  %v2718_v37 = vpop.permute.xlu0 %2717  ;;  %v2727_v43 = vsel %vm1150_vm2, %v2712_v16, %v2714_v42 }
 0x36d   : > { %v2747_v45 = vsel %vm680_vm14, %v2727_v43, 0  ;;  %v2739_v48 = vsel %vm1150_vm2, %v2718_v37, 0 }
 0x36e   : > { %3796 = vmatmul.mubr.msk.bf16.gmra.mrb[4].mxu1 %vm437_vm8, %v4235_v2  ;;  %v4247_v2 = vld [vmem:[%s5434_s3 + $0xc8] sm:$0xff]  }
 0x36f   : > { %2627 = vmatpush1.bf16.msra.mxu1 %v4903_v35  ;;  %2544 = vmatprep.mubr.bf16.mxu1 %v4267_v8  ;;  %v4237_v35 = vld [vmem:[%s5434_s3 + $0x78] sm:$0xff]  }
 0x370   : > { %2628 = vmatprep.subr.bf16.mxu1 %v4913_v52  ;;  %v2716_v52 = vpop.permute.xlu1 %2715  ;;  %v2722_v44 = vpop.permute.xlu0 %2721 }
 0x371   : > { %v2728_v47 = vsel %vm1150_vm2, %v2716_v52, %v2718_v37  ;;  %v2742_v55 = vsel %vm1150_vm2, %v2722_v44, 0 }
 0x372   : > { %v2749_v49 = vsel %vm680_vm14, %v2728_v47, 0 }
 0x373   : > { %2629 = vmatpush1.bf16.msra.mxu1 %v4911_v51  ;;  %v4238_v51 = vld [vmem:[%s5434_s3 + $0x80] sm:$0xff]  }
 0x374   : > { %3827 = vmatprep.subr.msk.bf16.mxu1 %vm681_vm13, %v2736_v19  ;;  %v2720_v46 = vpop.permute.xlu1 %2719  ;;  %v2726_v50 = vpop.permute.xlu0 %2725 }
 0x375   : > { %v2729_v54 = vsel %vm1150_vm2, %v2720_v46, %v2722_v44  ;;  %v2745_v60 = vsel %vm1150_vm2, %v2726_v50, 0 }
 0x376   : > { %3797 = vmatmul.mubr.msk.bf16.gmra.mrb[8].mxu1 %vm437_vm8, %v4236_v1  ;;  %v2751_v57 = vsel %vm680_vm14, %v2729_v54, 0 }
 0x377   : > { %2554 = vmatprep.mubr.bf16.mxu1 %v4267_v8 }
 0x378   : > { %v2724_v56 = vpop.permute.xlu1 %2723  ;;  %v2888_v3 = vpop.permute.xlu0 %2887 }
 0x379   : > { %v2730_v59 = vsel %vm1150_vm2, %v2724_v56, %v2726_v50  ;;  %v2910_v4 = vsel %vm1326_vm3, %v2888_v3, 0 }
 0x37a   : > { %v2753_v61 = vsel %vm680_vm14, %v2730_v59, 0 }
 0x37c   : > { %v2886_v5 = vpop.permute.xlu1 %2885  ;;  %v2892_v62 = vpop.permute.xlu0 %2891 }
 0x37d   : > { %v2901_v9 = vsel %vm1326_vm3, %v2886_v5, %v2888_v3  ;;  %v2913_v15 = vsel %vm1326_vm3, %v2892_v62, 0  ;;  %v4252_v5 = vld [vmem:[%s5434_s3 + $0xf0] sm:$0xff]  }
 0x37e   : > { %3798 = vmatmul.mubr.msk.bf16.gmra.mrb[12].mxu1 %vm437_vm8, %v4237_v35  ;;  %v2921_v11 = vsel %vm352_vm6, %v2901_v9, 0  ;;  %v4248_v35 = vld [vmem:[%s5434_s3 + $0xd0] sm:$0xff]  }
 0x37f   : > { %2654 = vmatprep.mubr.bf16.mxu1 %v4267_v8 }
 0x380   : > { %v2890_v7 = vpop.permute.xlu1 %2889  ;;  %v2896_v13 = vpop.permute.xlu0 %2895 }
 0x381   : > { %v2902_v14 = vsel %vm1326_vm3, %v2890_v7, %v2892_v62  ;;  %v2916_v21 = vsel %vm1326_vm3, %v2896_v13, 0  ;;  %v4256_v7 = vld [vmem:[%s5434_s3 + $0x110] sm:$0xff]   ;;  %v4257_v62 = vld [vmem:[%s5434_s3 + $0x118] sm:$0xff]  }
 0x382   : > { %v2923_v18 = vsel %vm352_vm6, %v2902_v14, 0 }
 0x384   : > { %v2894_v12 = vpop.permute.xlu1 %2893  ;;  %v2900_v23 = vpop.permute.xlu0 %2899 }
 0x385   : > { %v2903_v20 = vsel %vm1326_vm3, %v2894_v12, %v2896_v13  ;;  %v2919_v26 = vsel %vm1326_vm3, %v2900_v23, 0 }
 0x386   : > { %3811 = vmatmul.mubr.msk.bf16.vlgmr.msra.gmra.mrb[0].mxu1 %vm437_vm8, %v4238_v51  ;;  %v2925_v24 = vsel %vm352_vm6, %v2903_v20, 0  ;;  %v4249_v51 = vld [vmem:[%s5434_s3 + $0xd8] sm:$0xff]  }
 0x387   : > { %2797 = vmatpush1.bf16.msra.mxu1 %v2747_v45  ;;  %2664 = vmatprep.mubr.bf16.mxu1 %v4267_v8  ;;  %v4250_v45 = vld [vmem:[%s5434_s3 + $0xe0] sm:$0xff]  }
 0x388   : > { %3828 = vmatprep.subr.msk.bf16.mxu1 %vm681_vm13, %v2739_v48  ;;  %v2898_v22 = vpop.permute.xlu1 %2897  ;;  %v3062_v29 = vpop.permute.xlu0 %3061 }
 0x389   : > { %v2904_v25 = vsel %vm1326_vm3, %v2898_v22, %v2900_v23 }
 0x38a   : > { %v2927_v27 = vsel %vm352_vm6, %v2904_v25, 0 }
 0x38b   : > { %2799 = vmatpush1.bf16.msra.mxu1 %v2749_v49 }
 0x38c   : > { %3829 = vmatprep.subr.msk.bf16.mxu1 %vm681_vm13, %v2742_v55  ;;  %v3060_v30 = vpop.permute.xlu1 %3059  ;;  %v3066_v31 = vpop.permute.xlu0 %3065  ;;  %v4251_v55 = vld [vmem:[%s5434_s3 + $0xe8] sm:$0xff]  }
 0x38d   : > { %v3075_v38 = vsel %vm1502_vm4, %v3060_v30, %v3062_v29 }
 0x38e   : > { %3812 = vmatmul.mubr.msk.bf16.gmra.mrb[4].mxu1 %vm437_vm8, %v4239_v53 }
 0x38f   : > { %2801 = vmatpush1.bf16.msra.mxu1 %v2751_v57  ;;  %2674 = vmatprep.mubr.bf16.mxu1 %v4267_v8 }
 0x390   : > { %3830 = vmatprep.subr.msk.bf16.mxu1 %vm681_vm13, %v2745_v60  ;;  %v3064_v32 = vpop.permute.xlu1 %3063  ;;  %v3070_v36 = vpop.permute.xlu0 %3069 }
 0x391   : > { %v3076_v40 = vsel %vm1502_vm4, %v3064_v32, %v3066_v31 }
 0x393   : > { %2803 = vmatpush1.bf16.msra.mxu1 %v2753_v61 }
 0x394   : > { %3847 = vmatprep.subr.msk.bf16.mxu1 %vm353_vm7, %v2910_v4  ;;  %v3068_v39 = vpop.permute.xlu1 %3067  ;;  %v3074_v41 = vpop.permute.xlu0 %3073 }
 0x395   : > { %v3077_v42 = vsel %vm1502_vm4, %v3068_v39, %v3070_v36 }
 0x396   : > { %3813 = vmatmul.mubr.msk.bf16.gmra.mrb[8].mxu1 %vm437_vm8, %v4240_v0 }
 0x397   : > { %2684 = vmatprep.mubr.bf16.mxu1 %v4267_v8 }
 0x398   : > { %v3072_v1 = vpop.permute.xlu1 %3071  ;;  %v3228_v19 = vpop.permute.xlu0 %3227 }
 0x399   : > { %v3078_v16 = vsel %vm1502_vm4, %v3072_v1, %v3074_v41  ;;  %v3250_v37 = vsel %vm1670_vm9, %v3228_v19, 0 }
 0x39c   : > { %v3226_v52 = vpop.permute.xlu1 %3225  ;;  %v3232_v44 = vpop.permute.xlu0 %3231 }
 0x39d   : > { %v3241_v46 = vsel %vm1670_vm9, %v3226_v52, %v3228_v19  ;;  %v3253_v53 = vsel %vm1670_vm9, %v3232_v44, 0 }
 0x39e   : > { %3814 = vmatmul.mubr.msk.bf16.gmra.mrb[12].mxu1 %vm437_vm8, %v4241_v6  ;;  %v3261_v47 = vsel %vm680_vm14, %v3241_v46, 0  ;;  %v4253_v6 = vld [vmem:[%s5434_s3 + $0xf8] sm:$0xff]  }
 0x39f   : > { %2828 = vmatprep.mubr.bf16.mxu1 %v4267_v8 }
 0x3a0   : > { %v3230_v43 = vpop.permute.xlu1 %3229  ;;  %v3236_v49 = vpop.permute.xlu0 %3235 }
 0x3a1   : > { %v3242_v50 = vsel %vm1670_vm9, %v3230_v43, %v3232_v44  ;;  %v3256_v57 = vsel %vm1670_vm9, %v3236_v49, 0 }
 0x3a2   : > { %v3263_v54 = vsel %vm680_vm14, %v3242_v50, 0 }
 0x3a4   : > { %v3234_v48 = vpop.permute.xlu1 %3233  ;;  %v3240_v60 = vpop.permute.xlu0 %3239 }
 0x3a5   : > { %v3243_v56 = vsel %vm1670_vm9, %v3234_v48, %v3236_v49  ;;  %v3259_v0 = vsel %vm1670_vm9, %v3240_v60, 0 }
 0x3a6   : > { %3831 = vmatmul.mubr.msk.bf16.vlgmr.msra.gmra.mrb[0].mxu1 %vm437_vm8, %v4242_v63  ;;  %v3265_v3 = vsel %vm680_vm14, %v3243_v56, 0 }
 0x3a7   : > { %2971 = vmatpush1.bf16.msra.mxu1 %v2921_v11  ;;  %2838 = vmatprep.mubr.bf16.mxu1 %v4267_v8 }
 0x3a8   : > { %3848 = vmatprep.subr.msk.bf16.mxu1 %vm353_vm7, %v2913_v15  ;;  %v3238_v59 = vpop.permute.xlu1 %3237  ;;  %v3415_v12 = vpop.permute.xlu0 %3414 }
 0x3a9   : > { %v3244_v61 = vsel %vm1670_vm9, %v3238_v59, %v3240_v60 }
 0x3aa   : > { %v3267_v4 = vsel %vm680_vm14, %v3244_v61, 0 }
 0x3ab   : > { %2973 = vmatpush1.bf16.msra.mxu1 %v2923_v18 }
 0x3ac   : > { %3849 = vmatprep.subr.msk.bf16.mxu1 %vm353_vm7, %v2916_v21  ;;  %v3410_v63 = vpop.permute.xlu1 %3409 }
 0x3ae   : > { %3832 = vmatmul.mubr.msk.bf16.gmra.mrb[4].mxu1 %vm437_vm8, %v4243_v17 }
 0x3af   : > { %2975 = vmatpush1.bf16.msra.mxu1 %v2925_v24  ;;  %2848 = vmatprep.mubr.bf16.mxu1 %v4267_v8  ;;  %v3425_v24 = vpop.permute.xlu0 %3424 }
 0x3b0   : > { %3850 = vmatprep.subr.msk.bf16.mxu1 %vm353_vm7, %v2919_v26  ;;  %v3420_v20 = vpop.permute.xlu1 %3419 }
 0x3b3   : > { %2977 = vmatpush1.bf16.msra.mxu1 %v2927_v27  ;;  %v3435_v32 = vpop.permute.xlu0 %3434 }
 0x3b4   : > { %3867 = vmatprep.subr.msk.bf16.mxu1 %vm1502_vm4, %v3062_v29 }
 0x3b6   : > { %3833 = vmatmul.mubr.msk.bf16.gmra.mrb[8].mxu1 %vm437_vm8, %v4244_v28 }
 0x3b7   : > { %2858 = vmatprep.mubr.bf16.mxu1 %v4267_v8 }
 0x3be   : > { %3834 = vmatmul.mubr.msk.bf16.gmra.mrb[12].mxu1 %vm437_vm8, %v4245_v34  ;;  %v3430_v34 = vpop.permute.xlu1 %3429 }
 0x3bf   : > { %3002 = vmatprep.mubr.bf16.mxu1 %v4267_v8 }
 0x3c6   : > { %3851 = vmatmul.mubr.msk.bf16.vlgmr.msra.gmra.mrb[0].mxu1 %vm437_vm8, %v4246_v33 }
 0x3c7   : > { %3137 = vmatpush1.bf16.msra.mxu1 %v3075_v38  ;;  %3012 = vmatprep.mubr.bf16.mxu1 %v4267_v8 }
 0x3c8   : > { %3868 = vmatprep.subr.msk.bf16.mxu1 %vm1502_vm4, %v3066_v31 }
 0x3cb   : > { %3139 = vmatpush1.bf16.msra.mxu1 %v3076_v40 }
 0x3cc   : > { %3869 = vmatprep.subr.msk.bf16.mxu1 %vm1502_vm4, %v3070_v36 }
 0x3ce   : > { %3852 = vmatmul.mubr.msk.bf16.gmra.mrb[4].mxu1 %vm437_vm8, %v4247_v2  ;;  %v3440_v2 = vpop.permute.xlu1 %3439 }
 0x3cf   : > { %3141 = vmatpush1.bf16.msra.mxu1 %v3077_v42  ;;  %3022 = vmatprep.mubr.bf16.mxu1 %v4267_v8 }
 0x3d0   : > { %3870 = vmatprep.subr.msk.bf16.mxu1 %vm1502_vm4, %v3074_v41 }
 0x3d3   : > { %3143 = vmatpush1.bf16.msra.mxu1 %v3078_v16  ;;  %v3445_v16 = vpop.permute.xlu0 %3444 }
 0x3d4   : > { %3887 = vmatprep.subr.msk.bf16.mxu1 %vm681_vm13, %v3250_v37 }
 0x3d6   : > { %3853 = vmatmul.mubr.msk.bf16.gmra.mrb[8].mxu1 %vm437_vm8, %v4248_v35 }
 0x3d7   : > { %3032 = vmatprep.mubr.bf16.mxu1 %v4267_v8 }
 0x3de   : > { %3854 = vmatmul.mubr.msk.bf16.gmra.mrb[12].mxu1 %vm437_vm8, %v4249_v51 }
 0x3df   : > { %3168 = vmatprep.mubr.bf16.mxu1 %v4267_v8 }
 0x3e6   : > { %3871 = vmatmul.mubr.msk.bf16.vlgmr.msra.gmra.mrb[0].mxu1 %vm437_vm8, %v4250_v45 }
 0x3e7   : > { %3311 = vmatpush1.bf16.msra.mxu1 %v3261_v47  ;;  %3178 = vmatprep.mubr.bf16.mxu1 %v4267_v8 }
 0x3e8   : > { %3888 = vmatprep.subr.msk.bf16.mxu1 %vm681_vm13, %v3253_v53 }
 0x3eb   : > { %3313 = vmatpush1.bf16.msra.mxu1 %v3263_v54 }
 0x3ec   : > { %3889 = vmatprep.subr.msk.bf16.mxu1 %vm681_vm13, %v3256_v57 }
 0x3ee   : > { %3872 = vmatmul.mubr.msk.bf16.gmra.mrb[4].mxu1 %vm437_vm8, %v4251_v55 }
 0x3ef   : > { %3315 = vmatpush1.bf16.msra.mxu1 %v3265_v3  ;;  %3188 = vmatprep.mubr.bf16.mxu1 %v4267_v8 }
 0x3f0   : > { %3890 = vmatprep.subr.msk.bf16.mxu1 %vm681_vm13, %v3259_v0 }
 0x3f3   : > { %3317 = vmatpush1.bf16.msra.mxu1 %v3267_v4 }
 0x3f6   : > { %3873 = vmatmul.mubr.msk.bf16.gmra.mrb[8].mxu1 %vm437_vm8, %v4252_v5 }
 0x3f7   : > { %3198 = vmatprep.mubr.bf16.mxu1 %v4267_v8 }
 0x3fe   : > { %3874 = vmatmul.mubr.msk.bf16.gmra.mrb[12].mxu1 %vm437_vm8, %v4253_v6 }
 0x3ff   : > { %3342 = vmatprep.mubr.bf16.mxu1 %v4267_v8 }
 0x406   : > { %3891 = vmatmul.mubr.msk.bf16.vlgmr.msra.gmra.mrb[0].mxu1 %vm437_vm8, %v4254_v58 }
 0x407   : > { %3352 = vmatprep.mubr.bf16.mxu1 %v4267_v8 }
 0x40e   : > { %3892 = vmatmul.mubr.msk.bf16.gmra.mrb[4].mxu1 %vm437_vm8, %v4255_v10 }
 0x40f   : > { %3362 = vmatprep.mubr.bf16.mxu1 %v4267_v8 }
 0x416   : > { %3893 = vmatmul.mubr.msk.bf16.gmra.mrb[8].mxu1 %vm437_vm8, %v4256_v7 }
 0x417   : > { %3372 = vmatprep.mubr.bf16.mxu1 %v4267_v8 }
 0x41e   : > { %3894 = vmatmul.mubr.msk.bf16.gmra.mrb[12].mxu1 %vm437_vm8, %v4257_v62 }
 0x4d9   : > { %v3344_v9 = vpop.f32.mrb[0].mxu1 }
 0x4da   : > { %v3447_v11 = vadd.f32 %v3410_v63, %v3344_v9  ;;  %v3346_v8 = vpop.f32.mrb[1].mxu1 }
 0x4db   : > { %v3448_v13 = vadd.f32 %v3410_v63, %v3346_v8  ;;  %v3348_v14 = vpop.f32.mrb[2].mxu1 }
 0x4dc   : > { %3463 = vst [vmem:[%s5410_s21] sm:$0xff] %v3447_v11  ;;  %v3449_v15 = vadd.f32 %v3415_v12, %v3348_v14  ;;  %v3350_v18 = vpop.f32.mrb[3].mxu1 }
 0x4dd   : > { %3464 = vst [vmem:[%s5410_s21 + $0x8] sm:$0xff] %v3448_v13  ;;  %v3450_v17 = vadd.f32 %v3415_v12, %v3350_v18 }
 0x4de   : > { %3465 = vst [vmem:[%s5410_s21 + $0x10] sm:$0xff] %v3449_v15 }
 0x4df   : > { %3466 = vst [vmem:[%s5410_s21 + $0x18] sm:$0xff] %v3450_v17 }
 0x4e1   : > { %v3354_v21 = vpop.f32.mrb[4].mxu1 }
 0x4e2   : > { %v3451_v22 = vadd.f32 %v3420_v20, %v3354_v21  ;;  %v3356_v23 = vpop.f32.mrb[5].mxu1 }
 0x4e3   : > { %v3452_v25 = vadd.f32 %v3420_v20, %v3356_v23  ;;  %v3358_v26 = vpop.f32.mrb[6].mxu1 }
 0x4e4   : > { %3467 = vst [vmem:[%s5410_s21 + $0x20] sm:$0xff] %v3451_v22  ;;  %v3453_v27 = vadd.f32 %v3425_v24, %v3358_v26  ;;  %v3360_v28 = vpop.f32.mrb[7].mxu1 }
 0x4e5   : > { %3468 = vst [vmem:[%s5410_s21 + $0x28] sm:$0xff] %v3452_v25  ;;  %v3454_v29 = vadd.f32 %v3425_v24, %v3360_v28 }
 0x4e6   : > { %3469 = vst [vmem:[%s5410_s21 + $0x30] sm:$0xff] %v3453_v27 }
 0x4e7   : > { %3470 = vst [vmem:[%s5410_s21 + $0x38] sm:$0xff] %v3454_v29 }
 0x4e9   : > { %v3364_v30 = vpop.f32.mrb[8].mxu1 }
 0x4ea   : > { %v3455_v31 = vadd.f32 %v3430_v34, %v3364_v30  ;;  %v3366_v33 = vpop.f32.mrb[9].mxu1 }
 0x4eb   : > { %v3456_v36 = vadd.f32 %v3430_v34, %v3366_v33  ;;  %v3368_v38 = vpop.f32.mrb[10].mxu1 }
 0x4ec   : > { %3471 = vst [vmem:[%s5410_s21 + $0x40] sm:$0xff] %v3455_v31  ;;  %v3457_v39 = vadd.f32 %v3435_v32, %v3368_v38  ;;  %v3370_v40 = vpop.f32.mrb[11].mxu1 }
 0x4ed   : > { %3472 = vst [vmem:[%s5410_s21 + $0x48] sm:$0xff] %v3456_v36  ;;  %v3458_v41 = vadd.f32 %v3435_v32, %v3370_v40 }
 0x4ee   : > { %3473 = vst [vmem:[%s5410_s21 + $0x50] sm:$0xff] %v3457_v39 }
 0x4ef   : > { %3474 = vst [vmem:[%s5410_s21 + $0x58] sm:$0xff] %v3458_v41 }
 0x4f1   : > { %v3374_v42 = vpop.f32.mrb[12].mxu1 }
 0x4f2   : > { %v3459_v1 = vadd.f32 %v3440_v2, %v3374_v42  ;;  %v3376_v19 = vpop.f32.mrb[13].mxu1 }
 0x4f3   : > { %v3460_v35 = vadd.f32 %v3440_v2, %v3376_v19  ;;  %v3378_v37 = vpop.f32.mrb[14].mxu1 }
 0x4f4   : > { %3475 = vst [vmem:[%s5410_s21 + $0x60] sm:$0xff] %v3459_v1  ;;  %v3461_v52 = vadd.f32 %v3445_v16, %v3378_v37  ;;  %v3380_v51 = vpop.f32.mrb[15].mxu1 }
 0x4f5   : > { %3476 = vst [vmem:[%s5410_s21 + $0x68] sm:$0xff] %v3460_v35  ;;  %v3462_v43 = vadd.f32 %v3445_v16, %v3380_v51 }
 0x4f6   : > { %3477 = vst [vmem:[%s5410_s21 + $0x70] sm:$0xff] %v3461_v52 }
 0x4f7   : > { %3478 = vst [vmem:[%s5410_s21 + $0x78] sm:$0xff] %v3462_v43 }
 0x4f8 PF: > { %s15_s18 = sadd.s32 1, %s4264_s18  }
 0x4f9   : > { %p12_p4 = scmp.ge.s32.totalorder %s15_s18, 4  }
 0x4fb   :  { %14 = sbr.rel (!%p12_p4) target bundleno = 1 (0x1), region = 86 }

</bundles_post_ra>
